<compile_context>
chip_gen: v5e
topology: v5e:2x2
jax: 0.10.0
libtpu: 0.0.40
codegen_flags: <defaults>
</compile_context>

<pallas_src>
import numpy as np
import jax
import jax.numpy as jnp
from jax import lax
from jax.experimental import pallas as pl
from jax.experimental.pallas import tpu as pltpu


# ---------------------------------------------------------------------------
# Constant 0/1 row-selection matrices (parameter independent).
#   L1[kh][sh*12+ph, r] = 1  iff  r == 2*ph + sh + kh   (conv1: picks the 24
#       pooled-quadrant input rows out of the 28 image rows for tap row kh)
#   L2[kh][ti*4 +pi, r] = 1  iff  r == 2*pi + ti + kh   (conv2: 12 -> 8 rows)
# Row selection is done on the MXU, so the kernel performs no strided
# slicing / gathering of activation values at all.
# ---------------------------------------------------------------------------
def _selection_constants():
    l1 = np.zeros((5, 24, 28), np.float32)
    l2 = np.zeros((5, 8, 12), np.float32)
    for kh in range(5):
        for s in range(2):
            for p in range(12):
                l1[kh, s * 12 + p, 2 * p + s + kh] = 1.0
            for p in range(4):
                l2[kh, s * 4 + p, 2 * p + s + kh] = 1.0
    return l1, l2


_L1_NP, _L2_NP = _selection_constants()


# ---------------------------------------------------------------------------
# One-time parameter re-layout (weight prep only; no activation glue).
#
#   B1[sw*5+kh][iw, pw*15+c ]   = w1[kh, iw-2*pw-sw, c ]    (0 <= . < 5 else 0)
#   W2[tj*5+kh][j*15+c, pj*30+c2] = w2[kh, j -2*pj-tj, c, c2]
#
# With these banded matrices, conv + 2x2 max-pool become a handful of small
# matmuls plus elementwise maxima, keeping activations in a
# (rows = H, lanes = W*Cout) layout.
# ---------------------------------------------------------------------------
def _prepare_operands(params):
    # conv1 banded weights: (10, 28, 180), index sw*5 + kh
    w1 = params["w1"].reshape(5, 5, 15).astype(jnp.bfloat16)        # (kh, kw, c)
    base1 = jnp.pad(w1, ((0, 0), (0, 23), (0, 0)))                  # (5, 28, 15)
    b1_bands = []
    for sw in range(2):
        rolled = jnp.stack([jnp.roll(base1, 2 * pw + sw, axis=1)
                            for pw in range(12)], axis=0)           # (12,5,28,15)
        b1_bands.append(jnp.transpose(rolled, (1, 2, 0, 3)).reshape(5, 28, 180))
    b1_band = jnp.concatenate(b1_bands, axis=0)                     # (10, 28, 180)

    # conv2 banded weights: (10, 180, 120), index tj*5 + kh
    w2 = params["w2"].astype(jnp.bfloat16)                          # (5,5,15,30)
    base2 = jnp.pad(w2, ((0, 0), (0, 7), (0, 0), (0, 0)))           # (5,12,15,30)
    w2_bands = []
    for tj in range(2):
        rolled = jnp.stack([jnp.roll(base2, 2 * pj + tj, axis=1)
                            for pj in range(4)], axis=0)            # (4,5,12,15,30)
        w2_bands.append(jnp.transpose(rolled, (1, 2, 3, 0, 4)).reshape(5, 180, 120))
    w2_band = jnp.concatenate(w2_bands, axis=0)                     # (10, 180, 120)

    # fc1 rows permuted from PyTorch (C,H,W) flatten order to the kernel's
    # (H, W*C) layout -> removes the per-forward activation transpose.
    wf1p = (params["wf1"].reshape(30, 4, 4, 64)
            .transpose(1, 2, 0, 3).reshape(4, 120, 64).astype(jnp.bfloat16))

    return (
        jnp.asarray(_L1_NP, jnp.bfloat16),                          # (5, 24, 28)
        b1_band,                                                    # (10, 28, 180)
        jnp.tile(params["b1"].astype(jnp.float32), 12).reshape(1, 180),
        jnp.asarray(_L2_NP, jnp.bfloat16),                          # (5, 8, 12)
        w2_band,                                                    # (10, 180, 120)
        jnp.tile(params["b2"].astype(jnp.float32), 4).reshape(1, 120),
        wf1p,                                                       # (4, 120, 64)
        params["bf1"].astype(jnp.float32).reshape(1, 64),
        params["wf2"].astype(jnp.bfloat16),                         # (64, 10)
        params["bf2"].astype(jnp.float32).reshape(1, 10),
    )


# ---------------------------------------------------------------------------
# Fused forward kernel: one image per grid step.
# ---------------------------------------------------------------------------
def _base_model_kernel(x_ref, l1_ref, b1_ref, b1t_ref,
                       l2_ref, w2_ref, b2t_ref,
                       wf1_ref, bf1_ref, wf2_ref, bf2_ref, o_ref):
    f32 = jnp.float32
    bf16 = jnp.bfloat16
    x = x_ref[0]                                                    # (28, 28) bf16

    # --- conv1 (5x5, 1->15) + 2x2 max-pool + ReLU ---------------------------
    rows1 = [jnp.dot(l1_ref[kh], x, preferred_element_type=f32).astype(bf16)
             for kh in range(5)]                                    # 5 x (24, 28)
    q1 = None
    for sw in range(2):
        acc = None
        for kh in range(5):
            z = jnp.dot(rows1[kh], b1_ref[sw * 5 + kh],
                        preferred_element_type=f32)                 # (24, 180)
            acc = z if acc is None else acc + z
        q1 = acc if q1 is None else jnp.maximum(q1, acc)            # max over sw
    p1 = jnp.maximum(q1[0:12, :], q1[12:24, :])                     # max over sh
    # relu(maxpool(conv + b)) == relu(max_quadrants + b): bias is constant
    # over the pool window and ReLU is monotone.
    h1 = jnp.maximum(p1 + b1t_ref[...], 0.0).astype(bf16)           # (12, 180)

    # --- conv2 (5x5, 15->30) + 2x2 max-pool + ReLU --------------------------
    rows2 = [jnp.dot(l2_ref[kh], h1, preferred_element_type=f32).astype(bf16)
             for kh in range(5)]                                    # 5 x (8, 180)
    q2 = None
    for tj in range(2):
        acc = None
        for kh in range(5):
            z = jnp.dot(rows2[kh], w2_ref[tj * 5 + kh],
                        preferred_element_type=f32)                 # (8, 120)
            acc = z if acc is None else acc + z
        q2 = acc if q2 is None else jnp.maximum(q2, acc)
    p2 = jnp.maximum(q2[0:4, :], q2[4:8, :])                        # (4, 120)
    h2 = jnp.maximum(p2 + b2t_ref[...], 0.0).astype(bf16)           # (4, 120)

    # --- fc1 + ReLU + fc2 + LogSoftmax ---------------------------------------
    acc = jnp.dot(h2[0:1, :], wf1_ref[0], preferred_element_type=f32)
    for pi in range(1, 4):
        acc = acc + jnp.dot(h2[pi:pi + 1, :], wf1_ref[pi],
                            preferred_element_type=f32)             # (1, 64)
    hf = jnp.maximum(acc + bf1_ref[...], 0.0).astype(bf16)
    logits = jnp.dot(hf, wf2_ref[...], preferred_element_type=f32) + bf2_ref[...]
    z = logits - jnp.max(logits, axis=-1, keepdims=True)
    o_ref[0] = z - jnp.log(jnp.sum(jnp.exp(z), axis=-1, keepdims=True))


# ---------------------------------------------------------------------------
# Wrapper: single pallas_call for the whole network.
# ---------------------------------------------------------------------------
def base_model_forward(x_nchw, params):
    n = x_nchw.shape[0]
    x = x_nchw.reshape(n, 28, 28).astype(jnp.bfloat16)
    ops = _prepare_operands(params)

    flops_per_img = 2 * (5 * 24 * 28 * 28 + 10 * 24 * 28 * 180
                         + 5 * 8 * 12 * 180 + 10 * 8 * 180 * 120
                         + 4 * 120 * 64 + 64 * 10)
    weight_bytes = sum(int(np.prod(o.shape)) * o.dtype.itemsize for o in ops)
    cost = pl.CostEstimate(
        flops=n * flops_per_img,
        transcendentals=n * 11,
        bytes_accessed=n * (28 * 28 * 2 + 10 * 4) + weight_bytes)

    out = pl.pallas_call(
        _base_model_kernel,
        grid=(n,),
        in_specs=[
            pl.BlockSpec((1, 28, 28), lambda i: (i, 0, 0)),
            pl.BlockSpec((5, 24, 28), lambda i: (0, 0, 0)),
            pl.BlockSpec((10, 28, 180), lambda i: (0, 0, 0)),
            pl.BlockSpec((1, 180), lambda i: (0, 0)),
            pl.BlockSpec((5, 8, 12), lambda i: (0, 0, 0)),
            pl.BlockSpec((10, 180, 120), lambda i: (0, 0, 0)),
            pl.BlockSpec((1, 120), lambda i: (0, 0)),
            pl.BlockSpec((4, 120, 64), lambda i: (0, 0, 0)),
            pl.BlockSpec((1, 64), lambda i: (0, 0)),
            pl.BlockSpec((64, 10), lambda i: (0, 0)),
            pl.BlockSpec((1, 10), lambda i: (0, 0)),
        ],
        out_specs=pl.BlockSpec((1, 1, 10), lambda i: (i, 0, 0)),
        out_shape=jax.ShapeDtypeStruct((n, 1, 10), jnp.float32),
        compiler_params=pltpu.CompilerParams(
            dimension_semantics=("parallel",)),
        cost_estimate=cost,
    )(x, *ops)
    return out.reshape(n, 10)


# ---------------------------------------------------------------------------
# Pure-JAX reference (f32) and parameter init.
# ---------------------------------------------------------------------------
def reference_forward(x_nchw, params):
    dn = ("NCHW", "HWIO", "NCHW")
    y = lax.conv_general_dilated(x_nchw.astype(jnp.float32), params["w1"],
                                 (1, 1), "VALID", dimension_numbers=dn)
    y = y + params["b1"].reshape(1, -1, 1, 1)
    y = lax.reduce_window(y, -jnp.inf, lax.max, (1, 1, 2, 2), (1, 1, 2, 2), "VALID")
    y = jnp.maximum(y, 0.0)
    y = lax.conv_general_dilated(y, params["w2"], (1, 1), "VALID",
                                 dimension_numbers=dn)
    y = y + params["b2"].reshape(1, -1, 1, 1)
    y = lax.reduce_window(y, -jnp.inf, lax.max, (1, 1, 2, 2), (1, 1, 2, 2), "VALID")
    y = jnp.maximum(y, 0.0)
    f = y.reshape(y.shape[0], -1)                     # (N, 480) in (C, H, W) order
    h = jnp.maximum(f @ params["wf1"] + params["bf1"], 0.0)
    logits = h @ params["wf2"] + params["bf2"]
    return jax.nn.log_softmax(logits, axis=-1)


def init_params(key):
    ks = jax.random.split(key, 8)

    def conv_w(k, kh, kw, cin, cout):
        return jax.random.normal(k, (kh, kw, cin, cout), jnp.float32) / (kh * kw * cin) ** 0.5

    def lin_w(k, fin, fout):
        return jax.random.normal(k, (fin, fout), jnp.float32) / fin ** 0.5

    return {
        "w1": conv_w(ks[0], 5, 5, 1, 15),
        "b1": 0.1 * jax.random.normal(ks[1], (15,), jnp.float32),
        "w2": conv_w(ks[2], 5, 5, 15, 30),
        "b2": 0.1 * jax.random.normal(ks[3], (30,), jnp.float32),
        # wf1 rows are in PyTorch (C, H, W) flatten order.
        "wf1": lin_w(ks[4], 480, 64),
        "bf1": 0.1 * jax.random.normal(ks[5], (64,), jnp.float32),
        "wf2": lin_w(ks[6], 64, 10),
        "bf2": 0.1 * jax.random.normal(ks[7], (10,), jnp.float32),
    }


if __name__ == "__main__":
    key = jax.random.PRNGKey(0)
    pkey, xkey = jax.random.split(key)
    params = init_params(pkey)
    # 28x28 single-channel input is what fc1's 480 = 30*4*4 features imply.
    x = jax.random.normal(xkey, (2, 1, 28, 28), jnp.float32)

    fwd = jax.jit(base_model_forward)
    out = jax.block_until_ready(fwd(x, params))

    assert out.shape == (2, 10), out.shape
    assert out.dtype == jnp.float32, out.dtype
    # Log-softmax rows must (log-)normalize to 0.
    lse = jax.scipy.special.logsumexp(out, axis=1)
    assert jnp.allclose(lse, 0.0, atol=1e-3), lse
    # Match the f32 reference up to bf16 matmul-operand rounding.
    ref = reference_forward(x, params)
    assert jnp.allclose(out, ref, atol=0.1), float(jnp.max(jnp.abs(out - ref)))
    print("KERNEL_OK")
</pallas_src>

<mosaic_0001>
module attributes {stable_mosaic.version = 11 : i64} {
  func.func @_base_model_kernel(%arg0: i32, %arg1: memref<1x28x28xbf16, #tpu.memory_space<vmem>>, %arg2: memref<5x24x28xbf16, #tpu.memory_space<vmem>>, %arg3: memref<10x28x180xbf16, #tpu.memory_space<vmem>>, %arg4: memref<1x180xf32, #tpu.memory_space<vmem>>, %arg5: memref<5x8x12xbf16, #tpu.memory_space<vmem>>, %arg6: memref<10x180x120xbf16, #tpu.memory_space<vmem>>, %arg7: memref<1x120xf32, #tpu.memory_space<vmem>>, %arg8: memref<4x120x64xbf16, #tpu.memory_space<vmem>>, %arg9: memref<1x64xf32, #tpu.memory_space<vmem>>, %arg10: memref<64x10xbf16, #tpu.memory_space<vmem>>, %arg11: memref<1x10xf32, #tpu.memory_space<vmem>>, %arg12: memref<1x1x10xf32, #tpu.memory_space<vmem>>) attributes {dimension_semantics = [#tpu.dimension_semantics<parallel>], iteration_bounds = array<i64: 2>, scalar_prefetch = 0 : i64, scratch_operands = 0 : i64, tpu.core_type = #tpu.core_type<tc>, window_params = [{transform_indices = @transform_0, window_bounds = array<i64: 1, 28, 28>}, {pipeline_mode = #tpu.pipeline_mode<synchronous>, transform_indices = @transform_1, window_bounds = array<i64: 5, 24, 28>}, {pipeline_mode = #tpu.pipeline_mode<synchronous>, transform_indices = @transform_2, window_bounds = array<i64: 10, 28, 180>}, {pipeline_mode = #tpu.pipeline_mode<synchronous>, transform_indices = @transform_3, window_bounds = array<i64: 1, 180>}, {pipeline_mode = #tpu.pipeline_mode<synchronous>, transform_indices = @transform_4, window_bounds = array<i64: 5, 8, 12>}, {pipeline_mode = #tpu.pipeline_mode<synchronous>, transform_indices = @transform_5, window_bounds = array<i64: 10, 180, 120>}, {pipeline_mode = #tpu.pipeline_mode<synchronous>, transform_indices = @transform_6, window_bounds = array<i64: 1, 120>}, {pipeline_mode = #tpu.pipeline_mode<synchronous>, transform_indices = @transform_7, window_bounds = array<i64: 4, 120, 64>}, {pipeline_mode = #tpu.pipeline_mode<synchronous>, transform_indices = @transform_8, window_bounds = array<i64: 1, 64>}, {pipeline_mode = #tpu.pipeline_mode<synchronous>, transform_indices = @transform_9, window_bounds = array<i64: 64, 10>}, {pipeline_mode = #tpu.pipeline_mode<synchronous>, transform_indices = @transform_10, window_bounds = array<i64: 1, 10>}, {transform_indices = @transform_11, window_bounds = array<i64: 1, 1, 10>}]} {
    %c0 = arith.constant 0 : index
    %c0_0 = arith.constant 0 : index
    %c0_1 = arith.constant 0 : index
    %0 = vector.load %arg1[%c0, %c0_0, %c0_1] : memref<1x28x28xbf16, #tpu.memory_space<vmem>>, vector<1x28x28xbf16>
    %1 = vector.shape_cast %0 : vector<1x28x28xbf16> to vector<28x28xbf16>
    %c0_2 = arith.constant 0 : index
    %c0_3 = arith.constant 0 : index
    %c0_4 = arith.constant 0 : index
    %2 = vector.load %arg2[%c0_2, %c0_3, %c0_4] : memref<5x24x28xbf16, #tpu.memory_space<vmem>>, vector<1x24x28xbf16>
    %3 = vector.shape_cast %2 : vector<1x24x28xbf16> to vector<24x28xbf16>
    %cst = arith.constant dense<0.000000e+00> : vector<24x28xf32>
    %4 = tpu.matmul %3, %1, %cst {dimension_numbers = #tpu.dot_dimension_numbers<[1], [0], [0], [1], [0, 0, 1, 1], [], []>} : vector<24x28xbf16>, vector<28x28xbf16>, vector<24x28xf32> -> vector<24x28xf32>
    %5 = arith.truncf %4 : vector<24x28xf32> to vector<24x28xbf16>
    %c1 = arith.constant 1 : index
    %c0_5 = arith.constant 0 : index
    %c0_6 = arith.constant 0 : index
    %6 = vector.load %arg2[%c1, %c0_5, %c0_6] : memref<5x24x28xbf16, #tpu.memory_space<vmem>>, vector<1x24x28xbf16>
    %7 = vector.shape_cast %6 : vector<1x24x28xbf16> to vector<24x28xbf16>
    %cst_7 = arith.constant dense<0.000000e+00> : vector<24x28xf32>
    %8 = tpu.matmul %7, %1, %cst_7 {dimension_numbers = #tpu.dot_dimension_numbers<[1], [0], [0], [1], [0, 0, 1, 1], [], []>} : vector<24x28xbf16>, vector<28x28xbf16>, vector<24x28xf32> -> vector<24x28xf32>
    %9 = arith.truncf %8 : vector<24x28xf32> to vector<24x28xbf16>
    %c2 = arith.constant 2 : index
    %c0_8 = arith.constant 0 : index
    %c0_9 = arith.constant 0 : index
    %10 = vector.load %arg2[%c2, %c0_8, %c0_9] : memref<5x24x28xbf16, #tpu.memory_space<vmem>>, vector<1x24x28xbf16>
    %11 = vector.shape_cast %10 : vector<1x24x28xbf16> to vector<24x28xbf16>
    %cst_10 = arith.constant dense<0.000000e+00> : vector<24x28xf32>
    %12 = tpu.matmul %11, %1, %cst_10 {dimension_numbers = #tpu.dot_dimension_numbers<[1], [0], [0], [1], [0, 0, 1, 1], [], []>} : vector<24x28xbf16>, vector<28x28xbf16>, vector<24x28xf32> -> vector<24x28xf32>
    %13 = arith.truncf %12 : vector<24x28xf32> to vector<24x28xbf16>
    %c3 = arith.constant 3 : index
    %c0_11 = arith.constant 0 : index
    %c0_12 = arith.constant 0 : index
    %14 = vector.load %arg2[%c3, %c0_11, %c0_12] : memref<5x24x28xbf16, #tpu.memory_space<vmem>>, vector<1x24x28xbf16>
    %15 = vector.shape_cast %14 : vector<1x24x28xbf16> to vector<24x28xbf16>
    %cst_13 = arith.constant dense<0.000000e+00> : vector<24x28xf32>
    %16 = tpu.matmul %15, %1, %cst_13 {dimension_numbers = #tpu.dot_dimension_numbers<[1], [0], [0], [1], [0, 0, 1, 1], [], []>} : vector<24x28xbf16>, vector<28x28xbf16>, vector<24x28xf32> -> vector<24x28xf32>
    %17 = arith.truncf %16 : vector<24x28xf32> to vector<24x28xbf16>
    %c4 = arith.constant 4 : index
    %c0_14 = arith.constant 0 : index
    %c0_15 = arith.constant 0 : index
    %18 = vector.load %arg2[%c4, %c0_14, %c0_15] : memref<5x24x28xbf16, #tpu.memory_space<vmem>>, vector<1x24x28xbf16>
    %19 = vector.shape_cast %18 : vector<1x24x28xbf16> to vector<24x28xbf16>
    %cst_16 = arith.constant dense<0.000000e+00> : vector<24x28xf32>
    %20 = tpu.matmul %19, %1, %cst_16 {dimension_numbers = #tpu.dot_dimension_numbers<[1], [0], [0], [1], [0, 0, 1, 1], [], []>} : vector<24x28xbf16>, vector<28x28xbf16>, vector<24x28xf32> -> vector<24x28xf32>
    %21 = arith.truncf %20 : vector<24x28xf32> to vector<24x28xbf16>
    %c0_17 = arith.constant 0 : index
    %c0_18 = arith.constant 0 : index
    %c0_19 = arith.constant 0 : index
    %22 = vector.load %arg3[%c0_17, %c0_18, %c0_19] : memref<10x28x180xbf16, #tpu.memory_space<vmem>>, vector<1x28x180xbf16>
    %23 = vector.shape_cast %22 : vector<1x28x180xbf16> to vector<28x180xbf16>
    %cst_20 = arith.constant dense<0.000000e+00> : vector<24x180xf32>
    %24 = tpu.matmul %5, %23, %cst_20 {dimension_numbers = #tpu.dot_dimension_numbers<[1], [0], [0], [1], [0, 0, 1, 1], [], []>} : vector<24x28xbf16>, vector<28x180xbf16>, vector<24x180xf32> -> vector<24x180xf32>
    %c1_21 = arith.constant 1 : index
    %c0_22 = arith.constant 0 : index
    %c0_23 = arith.constant 0 : index
    %25 = vector.load %arg3[%c1_21, %c0_22, %c0_23] : memref<10x28x180xbf16, #tpu.memory_space<vmem>>, vector<1x28x180xbf16>
    %26 = vector.shape_cast %25 : vector<1x28x180xbf16> to vector<28x180xbf16>
    %cst_24 = arith.constant dense<0.000000e+00> : vector<24x180xf32>
    %27 = tpu.matmul %9, %26, %cst_24 {dimension_numbers = #tpu.dot_dimension_numbers<[1], [0], [0], [1], [0, 0, 1, 1], [], []>} : vector<24x28xbf16>, vector<28x180xbf16>, vector<24x180xf32> -> vector<24x180xf32>
    %28 = arith.addf %24, %27 : vector<24x180xf32>
    %c2_25 = arith.constant 2 : index
    %c0_26 = arith.constant 0 : index
    %c0_27 = arith.constant 0 : index
    %29 = vector.load %arg3[%c2_25, %c0_26, %c0_27] : memref<10x28x180xbf16, #tpu.memory_space<vmem>>, vector<1x28x180xbf16>
    %30 = vector.shape_cast %29 : vector<1x28x180xbf16> to vector<28x180xbf16>
    %cst_28 = arith.constant dense<0.000000e+00> : vector<24x180xf32>
    %31 = tpu.matmul %13, %30, %cst_28 {dimension_numbers = #tpu.dot_dimension_numbers<[1], [0], [0], [1], [0, 0, 1, 1], [], []>} : vector<24x28xbf16>, vector<28x180xbf16>, vector<24x180xf32> -> vector<24x180xf32>
    %32 = arith.addf %28, %31 : vector<24x180xf32>
    %c3_29 = arith.constant 3 : index
    %c0_30 = arith.constant 0 : index
    %c0_31 = arith.constant 0 : index
    %33 = vector.load %arg3[%c3_29, %c0_30, %c0_31] : memref<10x28x180xbf16, #tpu.memory_space<vmem>>, vector<1x28x180xbf16>
    %34 = vector.shape_cast %33 : vector<1x28x180xbf16> to vector<28x180xbf16>
    %cst_32 = arith.constant dense<0.000000e+00> : vector<24x180xf32>
    %35 = tpu.matmul %17, %34, %cst_32 {dimension_numbers = #tpu.dot_dimension_numbers<[1], [0], [0], [1], [0, 0, 1, 1], [], []>} : vector<24x28xbf16>, vector<28x180xbf16>, vector<24x180xf32> -> vector<24x180xf32>
    %36 = arith.addf %32, %35 : vector<24x180xf32>
    %c4_33 = arith.constant 4 : index
    %c0_34 = arith.constant 0 : index
    %c0_35 = arith.constant 0 : index
    %37 = vector.load %arg3[%c4_33, %c0_34, %c0_35] : memref<10x28x180xbf16, #tpu.memory_space<vmem>>, vector<1x28x180xbf16>
    %38 = vector.shape_cast %37 : vector<1x28x180xbf16> to vector<28x180xbf16>
    %cst_36 = arith.constant dense<0.000000e+00> : vector<24x180xf32>
    %39 = tpu.matmul %21, %38, %cst_36 {dimension_numbers = #tpu.dot_dimension_numbers<[1], [0], [0], [1], [0, 0, 1, 1], [], []>} : vector<24x28xbf16>, vector<28x180xbf16>, vector<24x180xf32> -> vector<24x180xf32>
    %40 = arith.addf %36, %39 : vector<24x180xf32>
    %c5 = arith.constant 5 : index
    %c0_37 = arith.constant 0 : index
    %c0_38 = arith.constant 0 : index
    %41 = vector.load %arg3[%c5, %c0_37, %c0_38] : memref<10x28x180xbf16, #tpu.memory_space<vmem>>, vector<1x28x180xbf16>
    %42 = vector.shape_cast %41 : vector<1x28x180xbf16> to vector<28x180xbf16>
    %cst_39 = arith.constant dense<0.000000e+00> : vector<24x180xf32>
    %43 = tpu.matmul %5, %42, %cst_39 {dimension_numbers = #tpu.dot_dimension_numbers<[1], [0], [0], [1], [0, 0, 1, 1], [], []>} : vector<24x28xbf16>, vector<28x180xbf16>, vector<24x180xf32> -> vector<24x180xf32>
    %c6 = arith.constant 6 : index
    %c0_40 = arith.constant 0 : index
    %c0_41 = arith.constant 0 : index
    %44 = vector.load %arg3[%c6, %c0_40, %c0_41] : memref<10x28x180xbf16, #tpu.memory_space<vmem>>, vector<1x28x180xbf16>
    %45 = vector.shape_cast %44 : vector<1x28x180xbf16> to vector<28x180xbf16>
    %cst_42 = arith.constant dense<0.000000e+00> : vector<24x180xf32>
    %46 = tpu.matmul %9, %45, %cst_42 {dimension_numbers = #tpu.dot_dimension_numbers<[1], [0], [0], [1], [0, 0, 1, 1], [], []>} : vector<24x28xbf16>, vector<28x180xbf16>, vector<24x180xf32> -> vector<24x180xf32>
    %47 = arith.addf %43, %46 : vector<24x180xf32>
    %c7 = arith.constant 7 : index
    %c0_43 = arith.constant 0 : index
    %c0_44 = arith.constant 0 : index
    %48 = vector.load %arg3[%c7, %c0_43, %c0_44] : memref<10x28x180xbf16, #tpu.memory_space<vmem>>, vector<1x28x180xbf16>
    %49 = vector.shape_cast %48 : vector<1x28x180xbf16> to vector<28x180xbf16>
    %cst_45 = arith.constant dense<0.000000e+00> : vector<24x180xf32>
    %50 = tpu.matmul %13, %49, %cst_45 {dimension_numbers = #tpu.dot_dimension_numbers<[1], [0], [0], [1], [0, 0, 1, 1], [], []>} : vector<24x28xbf16>, vector<28x180xbf16>, vector<24x180xf32> -> vector<24x180xf32>
    %51 = arith.addf %47, %50 : vector<24x180xf32>
    %c8 = arith.constant 8 : index
    %c0_46 = arith.constant 0 : index
    %c0_47 = arith.constant 0 : index
    %52 = vector.load %arg3[%c8, %c0_46, %c0_47] : memref<10x28x180xbf16, #tpu.memory_space<vmem>>, vector<1x28x180xbf16>
    %53 = vector.shape_cast %52 : vector<1x28x180xbf16> to vector<28x180xbf16>
    %cst_48 = arith.constant dense<0.000000e+00> : vector<24x180xf32>
    %54 = tpu.matmul %17, %53, %cst_48 {dimension_numbers = #tpu.dot_dimension_numbers<[1], [0], [0], [1], [0, 0, 1, 1], [], []>} : vector<24x28xbf16>, vector<28x180xbf16>, vector<24x180xf32> -> vector<24x180xf32>
    %55 = arith.addf %51, %54 : vector<24x180xf32>
    %c9 = arith.constant 9 : index
    %c0_49 = arith.constant 0 : index
    %c0_50 = arith.constant 0 : index
    %56 = vector.load %arg3[%c9, %c0_49, %c0_50] : memref<10x28x180xbf16, #tpu.memory_space<vmem>>, vector<1x28x180xbf16>
    %57 = vector.shape_cast %56 : vector<1x28x180xbf16> to vector<28x180xbf16>
    %cst_51 = arith.constant dense<0.000000e+00> : vector<24x180xf32>
    %58 = tpu.matmul %21, %57, %cst_51 {dimension_numbers = #tpu.dot_dimension_numbers<[1], [0], [0], [1], [0, 0, 1, 1], [], []>} : vector<24x28xbf16>, vector<28x180xbf16>, vector<24x180xf32> -> vector<24x180xf32>
    %59 = arith.addf %55, %58 : vector<24x180xf32>
    %60 = arith.maximumf %40, %59 : vector<24x180xf32>
    %61 = vector.extract_strided_slice %60 {offsets = [0, 0], sizes = [12, 180], strides = [1, 1]} : vector<24x180xf32> to vector<12x180xf32>
    %62 = vector.extract_strided_slice %60 {offsets = [12, 0], sizes = [12, 180], strides = [1, 1]} : vector<24x180xf32> to vector<12x180xf32>
    %63 = arith.maximumf %61, %62 : vector<12x180xf32>
    %c0_52 = arith.constant 0 : index
    %c0_53 = arith.constant 0 : index
    %64 = vector.load %arg4[%c0_52, %c0_53] : memref<1x180xf32, #tpu.memory_space<vmem>>, vector<1x180xf32>
    %65 = vector.broadcast %64 : vector<1x180xf32> to vector<12x180xf32>
    %66 = arith.addf %63, %65 : vector<12x180xf32>
    %cst_54 = arith.constant 0.000000e+00 : f32
    %67 = vector.broadcast %cst_54 : f32 to vector<12x180xf32>
    %68 = arith.maximumf %66, %67 : vector<12x180xf32>
    %69 = arith.truncf %68 : vector<12x180xf32> to vector<12x180xbf16>
    %c0_55 = arith.constant 0 : index
    %c0_56 = arith.constant 0 : index
    %c0_57 = arith.constant 0 : index
    %70 = vector.load %arg5[%c0_55, %c0_56, %c0_57] : memref<5x8x12xbf16, #tpu.memory_space<vmem>>, vector<1x8x12xbf16>
    %71 = vector.shape_cast %70 : vector<1x8x12xbf16> to vector<8x12xbf16>
    %cst_58 = arith.constant dense<0.000000e+00> : vector<8x180xf32>
    %72 = tpu.matmul %71, %69, %cst_58 {dimension_numbers = #tpu.dot_dimension_numbers<[1], [0], [0], [1], [0, 0, 1, 1], [], []>} : vector<8x12xbf16>, vector<12x180xbf16>, vector<8x180xf32> -> vector<8x180xf32>
    %73 = arith.truncf %72 : vector<8x180xf32> to vector<8x180xbf16>
    %c1_59 = arith.constant 1 : index
    %c0_60 = arith.constant 0 : index
    %c0_61 = arith.constant 0 : index
    %74 = vector.load %arg5[%c1_59, %c0_60, %c0_61] : memref<5x8x12xbf16, #tpu.memory_space<vmem>>, vector<1x8x12xbf16>
    %75 = vector.shape_cast %74 : vector<1x8x12xbf16> to vector<8x12xbf16>
    %cst_62 = arith.constant dense<0.000000e+00> : vector<8x180xf32>
    %76 = tpu.matmul %75, %69, %cst_62 {dimension_numbers = #tpu.dot_dimension_numbers<[1], [0], [0], [1], [0, 0, 1, 1], [], []>} : vector<8x12xbf16>, vector<12x180xbf16>, vector<8x180xf32> -> vector<8x180xf32>
    %77 = arith.truncf %76 : vector<8x180xf32> to vector<8x180xbf16>
    %c2_63 = arith.constant 2 : index
    %c0_64 = arith.constant 0 : index
    %c0_65 = arith.constant 0 : index
    %78 = vector.load %arg5[%c2_63, %c0_64, %c0_65] : memref<5x8x12xbf16, #tpu.memory_space<vmem>>, vector<1x8x12xbf16>
    %79 = vector.shape_cast %78 : vector<1x8x12xbf16> to vector<8x12xbf16>
    %cst_66 = arith.constant dense<0.000000e+00> : vector<8x180xf32>
    %80 = tpu.matmul %79, %69, %cst_66 {dimension_numbers = #tpu.dot_dimension_numbers<[1], [0], [0], [1], [0, 0, 1, 1], [], []>} : vector<8x12xbf16>, vector<12x180xbf16>, vector<8x180xf32> -> vector<8x180xf32>
    %81 = arith.truncf %80 : vector<8x180xf32> to vector<8x180xbf16>
    %c3_67 = arith.constant 3 : index
    %c0_68 = arith.constant 0 : index
    %c0_69 = arith.constant 0 : index
    %82 = vector.load %arg5[%c3_67, %c0_68, %c0_69] : memref<5x8x12xbf16, #tpu.memory_space<vmem>>, vector<1x8x12xbf16>
    %83 = vector.shape_cast %82 : vector<1x8x12xbf16> to vector<8x12xbf16>
    %cst_70 = arith.constant dense<0.000000e+00> : vector<8x180xf32>
    %84 = tpu.matmul %83, %69, %cst_70 {dimension_numbers = #tpu.dot_dimension_numbers<[1], [0], [0], [1], [0, 0, 1, 1], [], []>} : vector<8x12xbf16>, vector<12x180xbf16>, vector<8x180xf32> -> vector<8x180xf32>
    %85 = arith.truncf %84 : vector<8x180xf32> to vector<8x180xbf16>
    %c4_71 = arith.constant 4 : index
    %c0_72 = arith.constant 0 : index
    %c0_73 = arith.constant 0 : index
    %86 = vector.load %arg5[%c4_71, %c0_72, %c0_73] : memref<5x8x12xbf16, #tpu.memory_space<vmem>>, vector<1x8x12xbf16>
    %87 = vector.shape_cast %86 : vector<1x8x12xbf16> to vector<8x12xbf16>
    %cst_74 = arith.constant dense<0.000000e+00> : vector<8x180xf32>
    %88 = tpu.matmul %87, %69, %cst_74 {dimension_numbers = #tpu.dot_dimension_numbers<[1], [0], [0], [1], [0, 0, 1, 1], [], []>} : vector<8x12xbf16>, vector<12x180xbf16>, vector<8x180xf32> -> vector<8x180xf32>
    %89 = arith.truncf %88 : vector<8x180xf32> to vector<8x180xbf16>
    %c0_75 = arith.constant 0 : index
    %c0_76 = arith.constant 0 : index
    %c0_77 = arith.constant 0 : index
    %90 = vector.load %arg6[%c0_75, %c0_76, %c0_77] : memref<10x180x120xbf16, #tpu.memory_space<vmem>>, vector<1x180x120xbf16>
    %91 = vector.shape_cast %90 : vector<1x180x120xbf16> to vector<180x120xbf16>
    %cst_78 = arith.constant dense<0.000000e+00> : vector<8x120xf32>
    %92 = tpu.matmul %73, %91, %cst_78 {dimension_numbers = #tpu.dot_dimension_numbers<[1], [0], [0], [1], [0, 0, 1, 1], [], []>} : vector<8x180xbf16>, vector<180x120xbf16>, vector<8x120xf32> -> vector<8x120xf32>
    %c1_79 = arith.constant 1 : index
    %c0_80 = arith.constant 0 : index
    %c0_81 = arith.constant 0 : index
    %93 = vector.load %arg6[%c1_79, %c0_80, %c0_81] : memref<10x180x120xbf16, #tpu.memory_space<vmem>>, vector<1x180x120xbf16>
    %94 = vector.shape_cast %93 : vector<1x180x120xbf16> to vector<180x120xbf16>
    %cst_82 = arith.constant dense<0.000000e+00> : vector<8x120xf32>
    %95 = tpu.matmul %77, %94, %cst_82 {dimension_numbers = #tpu.dot_dimension_numbers<[1], [0], [0], [1], [0, 0, 1, 1], [], []>} : vector<8x180xbf16>, vector<180x120xbf16>, vector<8x120xf32> -> vector<8x120xf32>
    %96 = arith.addf %92, %95 : vector<8x120xf32>
    %c2_83 = arith.constant 2 : index
    %c0_84 = arith.constant 0 : index
    %c0_85 = arith.constant 0 : index
    %97 = vector.load %arg6[%c2_83, %c0_84, %c0_85] : memref<10x180x120xbf16, #tpu.memory_space<vmem>>, vector<1x180x120xbf16>
    %98 = vector.shape_cast %97 : vector<1x180x120xbf16> to vector<180x120xbf16>
    %cst_86 = arith.constant dense<0.000000e+00> : vector<8x120xf32>
    %99 = tpu.matmul %81, %98, %cst_86 {dimension_numbers = #tpu.dot_dimension_numbers<[1], [0], [0], [1], [0, 0, 1, 1], [], []>} : vector<8x180xbf16>, vector<180x120xbf16>, vector<8x120xf32> -> vector<8x120xf32>
    %100 = arith.addf %96, %99 : vector<8x120xf32>
    %c3_87 = arith.constant 3 : index
    %c0_88 = arith.constant 0 : index
    %c0_89 = arith.constant 0 : index
    %101 = vector.load %arg6[%c3_87, %c0_88, %c0_89] : memref<10x180x120xbf16, #tpu.memory_space<vmem>>, vector<1x180x120xbf16>
    %102 = vector.shape_cast %101 : vector<1x180x120xbf16> to vector<180x120xbf16>
    %cst_90 = arith.constant dense<0.000000e+00> : vector<8x120xf32>
    %103 = tpu.matmul %85, %102, %cst_90 {dimension_numbers = #tpu.dot_dimension_numbers<[1], [0], [0], [1], [0, 0, 1, 1], [], []>} : vector<8x180xbf16>, vector<180x120xbf16>, vector<8x120xf32> -> vector<8x120xf32>
    %104 = arith.addf %100, %103 : vector<8x120xf32>
    %c4_91 = arith.constant 4 : index
    %c0_92 = arith.constant 0 : index
    %c0_93 = arith.constant 0 : index
    %105 = vector.load %arg6[%c4_91, %c0_92, %c0_93] : memref<10x180x120xbf16, #tpu.memory_space<vmem>>, vector<1x180x120xbf16>
    %106 = vector.shape_cast %105 : vector<1x180x120xbf16> to vector<180x120xbf16>
    %cst_94 = arith.constant dense<0.000000e+00> : vector<8x120xf32>
    %107 = tpu.matmul %89, %106, %cst_94 {dimension_numbers = #tpu.dot_dimension_numbers<[1], [0], [0], [1], [0, 0, 1, 1], [], []>} : vector<8x180xbf16>, vector<180x120xbf16>, vector<8x120xf32> -> vector<8x120xf32>
    %108 = arith.addf %104, %107 : vector<8x120xf32>
    %c5_95 = arith.constant 5 : index
    %c0_96 = arith.constant 0 : index
    %c0_97 = arith.constant 0 : index
    %109 = vector.load %arg6[%c5_95, %c0_96, %c0_97] : memref<10x180x120xbf16, #tpu.memory_space<vmem>>, vector<1x180x120xbf16>
    %110 = vector.shape_cast %109 : vector<1x180x120xbf16> to vector<180x120xbf16>
    %cst_98 = arith.constant dense<0.000000e+00> : vector<8x120xf32>
    %111 = tpu.matmul %73, %110, %cst_98 {dimension_numbers = #tpu.dot_dimension_numbers<[1], [0], [0], [1], [0, 0, 1, 1], [], []>} : vector<8x180xbf16>, vector<180x120xbf16>, vector<8x120xf32> -> vector<8x120xf32>
    %c6_99 = arith.constant 6 : index
    %c0_100 = arith.constant 0 : index
    %c0_101 = arith.constant 0 : index
    %112 = vector.load %arg6[%c6_99, %c0_100, %c0_101] : memref<10x180x120xbf16, #tpu.memory_space<vmem>>, vector<1x180x120xbf16>
    %113 = vector.shape_cast %112 : vector<1x180x120xbf16> to vector<180x120xbf16>
    %cst_102 = arith.constant dense<0.000000e+00> : vector<8x120xf32>
    %114 = tpu.matmul %77, %113, %cst_102 {dimension_numbers = #tpu.dot_dimension_numbers<[1], [0], [0], [1], [0, 0, 1, 1], [], []>} : vector<8x180xbf16>, vector<180x120xbf16>, vector<8x120xf32> -> vector<8x120xf32>
    %115 = arith.addf %111, %114 : vector<8x120xf32>
    %c7_103 = arith.constant 7 : index
    %c0_104 = arith.constant 0 : index
    %c0_105 = arith.constant 0 : index
    %116 = vector.load %arg6[%c7_103, %c0_104, %c0_105] : memref<10x180x120xbf16, #tpu.memory_space<vmem>>, vector<1x180x120xbf16>
    %117 = vector.shape_cast %116 : vector<1x180x120xbf16> to vector<180x120xbf16>
    %cst_106 = arith.constant dense<0.000000e+00> : vector<8x120xf32>
    %118 = tpu.matmul %81, %117, %cst_106 {dimension_numbers = #tpu.dot_dimension_numbers<[1], [0], [0], [1], [0, 0, 1, 1], [], []>} : vector<8x180xbf16>, vector<180x120xbf16>, vector<8x120xf32> -> vector<8x120xf32>
    %119 = arith.addf %115, %118 : vector<8x120xf32>
    %c8_107 = arith.constant 8 : index
    %c0_108 = arith.constant 0 : index
    %c0_109 = arith.constant 0 : index
    %120 = vector.load %arg6[%c8_107, %c0_108, %c0_109] : memref<10x180x120xbf16, #tpu.memory_space<vmem>>, vector<1x180x120xbf16>
    %121 = vector.shape_cast %120 : vector<1x180x120xbf16> to vector<180x120xbf16>
    %cst_110 = arith.constant dense<0.000000e+00> : vector<8x120xf32>
    %122 = tpu.matmul %85, %121, %cst_110 {dimension_numbers = #tpu.dot_dimension_numbers<[1], [0], [0], [1], [0, 0, 1, 1], [], []>} : vector<8x180xbf16>, vector<180x120xbf16>, vector<8x120xf32> -> vector<8x120xf32>
    %123 = arith.addf %119, %122 : vector<8x120xf32>
    %c9_111 = arith.constant 9 : index
    %c0_112 = arith.constant 0 : index
    %c0_113 = arith.constant 0 : index
    %124 = vector.load %arg6[%c9_111, %c0_112, %c0_113] : memref<10x180x120xbf16, #tpu.memory_space<vmem>>, vector<1x180x120xbf16>
    %125 = vector.shape_cast %124 : vector<1x180x120xbf16> to vector<180x120xbf16>
    %cst_114 = arith.constant dense<0.000000e+00> : vector<8x120xf32>
    %126 = tpu.matmul %89, %125, %cst_114 {dimension_numbers = #tpu.dot_dimension_numbers<[1], [0], [0], [1], [0, 0, 1, 1], [], []>} : vector<8x180xbf16>, vector<180x120xbf16>, vector<8x120xf32> -> vector<8x120xf32>
    %127 = arith.addf %123, %126 : vector<8x120xf32>
    %128 = arith.maximumf %108, %127 : vector<8x120xf32>
    %129 = vector.extract_strided_slice %128 {offsets = [0, 0], sizes = [4, 120], strides = [1, 1]} : vector<8x120xf32> to vector<4x120xf32>
    %130 = vector.extract_strided_slice %128 {offsets = [4, 0], sizes = [4, 120], strides = [1, 1]} : vector<8x120xf32> to vector<4x120xf32>
    %131 = arith.maximumf %129, %130 : vector<4x120xf32>
    %c0_115 = arith.constant 0 : index
    %c0_116 = arith.constant 0 : index
    %132 = vector.load %arg7[%c0_115, %c0_116] : memref<1x120xf32, #tpu.memory_space<vmem>>, vector<1x120xf32>
    %133 = vector.broadcast %132 : vector<1x120xf32> to vector<4x120xf32>
    %134 = arith.addf %131, %133 : vector<4x120xf32>
    %cst_117 = arith.constant 0.000000e+00 : f32
    %135 = vector.broadcast %cst_117 : f32 to vector<4x120xf32>
    %136 = arith.maximumf %134, %135 : vector<4x120xf32>
    %137 = arith.truncf %136 : vector<4x120xf32> to vector<4x120xbf16>
    %138 = vector.extract_strided_slice %137 {offsets = [0, 0], sizes = [1, 120], strides = [1, 1]} : vector<4x120xbf16> to vector<1x120xbf16>
    %c0_118 = arith.constant 0 : index
    %c0_119 = arith.constant 0 : index
    %c0_120 = arith.constant 0 : index
    %139 = vector.load %arg8[%c0_118, %c0_119, %c0_120] : memref<4x120x64xbf16, #tpu.memory_space<vmem>>, vector<1x120x64xbf16>
    %140 = vector.shape_cast %139 : vector<1x120x64xbf16> to vector<120x64xbf16>
    %cst_121 = arith.constant dense<0.000000e+00> : vector<1x64xf32>
    %141 = tpu.matmul %138, %140, %cst_121 {dimension_numbers = #tpu.dot_dimension_numbers<[1], [0], [0], [1], [0, 0, 1, 1], [], []>} : vector<1x120xbf16>, vector<120x64xbf16>, vector<1x64xf32> -> vector<1x64xf32>
    %142 = vector.extract_strided_slice %137 {offsets = [1, 0], sizes = [1, 120], strides = [1, 1]} : vector<4x120xbf16> to vector<1x120xbf16>
    %c1_122 = arith.constant 1 : index
    %c0_123 = arith.constant 0 : index
    %c0_124 = arith.constant 0 : index
    %143 = vector.load %arg8[%c1_122, %c0_123, %c0_124] : memref<4x120x64xbf16, #tpu.memory_space<vmem>>, vector<1x120x64xbf16>
    %144 = vector.shape_cast %143 : vector<1x120x64xbf16> to vector<120x64xbf16>
    %cst_125 = arith.constant dense<0.000000e+00> : vector<1x64xf32>
    %145 = tpu.matmul %142, %144, %cst_125 {dimension_numbers = #tpu.dot_dimension_numbers<[1], [0], [0], [1], [0, 0, 1, 1], [], []>} : vector<1x120xbf16>, vector<120x64xbf16>, vector<1x64xf32> -> vector<1x64xf32>
    %146 = arith.addf %141, %145 : vector<1x64xf32>
    %147 = vector.extract_strided_slice %137 {offsets = [2, 0], sizes = [1, 120], strides = [1, 1]} : vector<4x120xbf16> to vector<1x120xbf16>
    %c2_126 = arith.constant 2 : index
    %c0_127 = arith.constant 0 : index
    %c0_128 = arith.constant 0 : index
    %148 = vector.load %arg8[%c2_126, %c0_127, %c0_128] : memref<4x120x64xbf16, #tpu.memory_space<vmem>>, vector<1x120x64xbf16>
    %149 = vector.shape_cast %148 : vector<1x120x64xbf16> to vector<120x64xbf16>
    %cst_129 = arith.constant dense<0.000000e+00> : vector<1x64xf32>
    %150 = tpu.matmul %147, %149, %cst_129 {dimension_numbers = #tpu.dot_dimension_numbers<[1], [0], [0], [1], [0, 0, 1, 1], [], []>} : vector<1x120xbf16>, vector<120x64xbf16>, vector<1x64xf32> -> vector<1x64xf32>
    %151 = arith.addf %146, %150 : vector<1x64xf32>
    %152 = vector.extract_strided_slice %137 {offsets = [3, 0], sizes = [1, 120], strides = [1, 1]} : vector<4x120xbf16> to vector<1x120xbf16>
    %c3_130 = arith.constant 3 : index
    %c0_131 = arith.constant 0 : index
    %c0_132 = arith.constant 0 : index
    %153 = vector.load %arg8[%c3_130, %c0_131, %c0_132] : memref<4x120x64xbf16, #tpu.memory_space<vmem>>, vector<1x120x64xbf16>
    %154 = vector.shape_cast %153 : vector<1x120x64xbf16> to vector<120x64xbf16>
    %cst_133 = arith.constant dense<0.000000e+00> : vector<1x64xf32>
    %155 = tpu.matmul %152, %154, %cst_133 {dimension_numbers = #tpu.dot_dimension_numbers<[1], [0], [0], [1], [0, 0, 1, 1], [], []>} : vector<1x120xbf16>, vector<120x64xbf16>, vector<1x64xf32> -> vector<1x64xf32>
    %156 = arith.addf %151, %155 : vector<1x64xf32>
    %c0_134 = arith.constant 0 : index
    %c0_135 = arith.constant 0 : index
    %157 = vector.load %arg9[%c0_134, %c0_135] : memref<1x64xf32, #tpu.memory_space<vmem>>, vector<1x64xf32>
    %158 = arith.addf %156, %157 : vector<1x64xf32>
    %cst_136 = arith.constant 0.000000e+00 : f32
    %159 = vector.broadcast %cst_136 : f32 to vector<1x64xf32>
    %160 = arith.maximumf %158, %159 : vector<1x64xf32>
    %161 = arith.truncf %160 : vector<1x64xf32> to vector<1x64xbf16>
    %c0_137 = arith.constant 0 : index
    %c0_138 = arith.constant 0 : index
    %162 = vector.load %arg10[%c0_137, %c0_138] : memref<64x10xbf16, #tpu.memory_space<vmem>>, vector<64x10xbf16>
    %cst_139 = arith.constant dense<0.000000e+00> : vector<1x10xf32>
    %163 = tpu.matmul %161, %162, %cst_139 {dimension_numbers = #tpu.dot_dimension_numbers<[1], [0], [0], [1], [0, 0, 1, 1], [], []>} : vector<1x64xbf16>, vector<64x10xbf16>, vector<1x10xf32> -> vector<1x10xf32>
    %c0_140 = arith.constant 0 : index
    %c0_141 = arith.constant 0 : index
    %164 = vector.load %arg11[%c0_140, %c0_141] : memref<1x10xf32, #tpu.memory_space<vmem>>, vector<1x10xf32>
    %165 = arith.addf %163, %164 : vector<1x10xf32>
    %cst_142 = arith.constant dense<0xFF800000> : vector<1xf32>
    %166 = vector.multi_reduction <maximumf>, %165, %cst_142 [1] : vector<1x10xf32> to vector<1xf32>
    %167 = vector.shape_cast %166 : vector<1xf32> to vector<1x1xf32>
    %168 = vector.broadcast %167 : vector<1x1xf32> to vector<1x10xf32>
    %169 = arith.subf %165, %168 : vector<1x10xf32>
    %170 = math.exp %169 : vector<1x10xf32>
    %cst_143 = arith.constant dense<0.000000e+00> : vector<1xf32>
    %171 = vector.multi_reduction <add>, %170, %cst_143 [1] : vector<1x10xf32> to vector<1xf32>
    %172 = vector.shape_cast %171 : vector<1xf32> to vector<1x1xf32>
    %173 = math.log %172 : vector<1x1xf32>
    %174 = vector.broadcast %173 : vector<1x1xf32> to vector<1x10xf32>
    %175 = arith.subf %169, %174 : vector<1x10xf32>
    %c0_144 = arith.constant 0 : index
    %c0_145 = arith.constant 0 : index
    %c0_146 = arith.constant 0 : index
    %176 = vector.load %arg12[%c0_144, %c0_145, %c0_146] : memref<1x1x10xf32, #tpu.memory_space<vmem>>, vector<1x1x10xf32>
    %177 = vector.shape_cast %176 : vector<1x1x10xf32> to vector<1x10xf32>
    %178 = vector.shape_cast %175 : vector<1x10xf32> to vector<1x1x10xf32>
    tpu.vector_store %arg12[%c0_144, %c0_145, %c0_146], %178 {strides = array<i32>} : memref<1x1x10xf32, #tpu.memory_space<vmem>>, vector<1x1x10xf32>,
    return
  }
  func.func @transform_0(%arg0: i32) -> (i32, i32, i32) {
    %c0_i32 = arith.constant 0 : i32
    %c0_i32_0 = arith.constant 0 : i32
    %c0_i32_1 = arith.constant 0 : i32
    return %arg0, %c0_i32, %c0_i32_0 : i32, i32, i32
  }
  func.func @transform_1(%arg0: i32) -> (i32, i32, i32) {
    %c0_i32 = arith.constant 0 : i32
    %c0_i32_0 = arith.constant 0 : i32
    %c0_i32_1 = arith.constant 0 : i32
    %c0_i32_2 = arith.constant 0 : i32
    return %c0_i32, %c0_i32_0, %c0_i32_1 : i32, i32, i32
  }
  func.func @transform_2(%arg0: i32) -> (i32, i32, i32) {
    %c0_i32 = arith.constant 0 : i32
    %c0_i32_0 = arith.constant 0 : i32
    %c0_i32_1 = arith.constant 0 : i32
    %c0_i32_2 = arith.constant 0 : i32
    return %c0_i32, %c0_i32_0, %c0_i32_1 : i32, i32, i32
  }
  func.func @transform_3(%arg0: i32) -> (i32, i32) {
    %c0_i32 = arith.constant 0 : i32
    %c0_i32_0 = arith.constant 0 : i32
    %c0_i32_1 = arith.constant 0 : i32
    return %c0_i32, %c0_i32_0 : i32, i32
  }
  func.func @transform_4(%arg0: i32) -> (i32, i32, i32) {
    %c0_i32 = arith.constant 0 : i32
    %c0_i32_0 = arith.constant 0 : i32
    %c0_i32_1 = arith.constant 0 : i32
    %c0_i32_2 = arith.constant 0 : i32
    return %c0_i32, %c0_i32_0, %c0_i32_1 : i32, i32, i32
  }
  func.func @transform_5(%arg0: i32) -> (i32, i32, i32) {
    %c0_i32 = arith.constant 0 : i32
    %c0_i32_0 = arith.constant 0 : i32
    %c0_i32_1 = arith.constant 0 : i32
    %c0_i32_2 = arith.constant 0 : i32
    return %c0_i32, %c0_i32_0, %c0_i32_1 : i32, i32, i32
  }
  func.func @transform_6(%arg0: i32) -> (i32, i32) {
    %c0_i32 = arith.constant 0 : i32
    %c0_i32_0 = arith.constant 0 : i32
    %c0_i32_1 = arith.constant 0 : i32
    return %c0_i32, %c0_i32_0 : i32, i32
  }
  func.func @transform_7(%arg0: i32) -> (i32, i32, i32) {
    %c0_i32 = arith.constant 0 : i32
    %c0_i32_0 = arith.constant 0 : i32
    %c0_i32_1 = arith.constant 0 : i32
    %c0_i32_2 = arith.constant 0 : i32
    return %c0_i32, %c0_i32_0, %c0_i32_1 : i32, i32, i32
  }
  func.func @transform_8(%arg0: i32) -> (i32, i32) {
    %c0_i32 = arith.constant 0 : i32
    %c0_i32_0 = arith.constant 0 : i32
    %c0_i32_1 = arith.constant 0 : i32
    return %c0_i32, %c0_i32_0 : i32, i32
  }
  func.func @transform_9(%arg0: i32) -> (i32, i32) {
    %c0_i32 = arith.constant 0 : i32
    %c0_i32_0 = arith.constant 0 : i32
    %c0_i32_1 = arith.constant 0 : i32
    return %c0_i32, %c0_i32_0 : i32, i32
  }
  func.func @transform_10(%arg0: i32) -> (i32, i32) {
    %c0_i32 = arith.constant 0 : i32
    %c0_i32_0 = arith.constant 0 : i32
    %c0_i32_1 = arith.constant 0 : i32
    return %c0_i32, %c0_i32_0 : i32, i32
  }
  func.func @transform_11(%arg0: i32) -> (i32, i32, i32) {
    %c0_i32 = arith.constant 0 : i32
    %c0_i32_0 = arith.constant 0 : i32
    %c0_i32_1 = arith.constant 0 : i32
    return %arg0, %c0_i32, %c0_i32_0 : i32, i32, i32
  }
}

</mosaic_0001>

<bundles_post_ra>
// kernel: tile.13
= control target key start
LH: loop header
LB: loop body
LE: loop exit
PB: predicated region body
PF: predicated region fallthrough
CT: control target
= control target key end

     0   :  { %s28_s0 = inlined_call_operand.vmem [shape: f32[15], index: 0, kind: input, shape index: {}]   ;;  %s29_s1 = inlined_call_operand.vmem [shape: f32[12,15], index: 1, kind: output, shape index: {}]  }
   0x1   :  { %v4_v0 = vld [vmem:[%s28_s0] ss:$0 sm:$0xff] }
   0x2   :  { %5 = vst [vmem:[%s29_s1] sm:$0xff] %v4_v0 }
   0x3   :  { %8 = vst [vmem:[%s29_s1 + $0x8] sm:$0xff] %v4_v0 }

// kernel: tile.14
= control target key start
LH: loop header
LB: loop body
LE: loop exit
PB: predicated region body
PF: predicated region fallthrough
CT: control target
= control target key end

     0   :  { %vm9_vm0 = vcmask 64512   ;;  %s117_s10 = smov 90   ;;  %s118_s13 = smov 120   ;;  %vm3_vm1 = vcmask 121856   ;;  %vm13_vm2 = vcmask 56320   ;;  %vm16_vm3 = vcmask 1048512   ;;  %s183_s0 = inlined_call_operand.vmem [shape: f32[12,15], index: 0, kind: input, shape index: {}]   ;;  %s184_s1 = inlined_call_operand.vmem [shape: f32[1,180], index: 1, kind: output, shape index: {}]  }
   0x1   :  { %v96_v0 = vld [vmem:[%s183_s0 + $0x6] sm:$0x1]   ;;  %v93_v1 = vld [vmem:[%s183_s0 + $0x8] sm:$0x1]   ;;  %v98_v4 = vld [vmem:[%s183_s0 + $0x4] sm:$0x1]  }
   0x2   :  { %26 = vrot.lane.b32.xlu1 %v96_v0, %s117_s10  ;;  %v94_v2 = vld [vmem:[%s183_s0 + $0x8] sm:$0x1]   ;;  %s119_s16 = smov 60   ;;  %v97_v5 = vld [vmem:[%s183_s0 + $0x5] sm:$0x1]   ;;  %s120_s21 = smov 75  }
   0x3   :  { %v10_v3 = vsel %vm9_vm0, %v94_v2, %v93_v1  ;;  %38 = vrot.lane.b32.xlu2 %v98_v4, %s119_s16  ;;  %v95_v6 = vld [vmem:[%s183_s0 + $0x7] sm:$0x1]   ;;  %v99_v7 = vld [vmem:[%s183_s0 + $0x3] sm:$0x1]   ;;  %s121_s24 = smov 105   ;;  %s122_s25 = smov 45  }
   0x4   :  { %11 = vrot.lane.b32.xlu0 %v10_v3, %s118_s13  ;;  %v101_v8 = vld [vmem:[%s183_s0 + $0x2] sm:$0x1]   ;;  %v100_v9 = vld [vmem:[%s183_s0 + $0xb] sm:$0x1]   ;;  %s123_s30 = smov 30   ;;  %s124_s4 = smov 37  }
   0x5   :  { %v102_v10 = vld [vmem:[%s183_s0 + $0xa] sm:$0x1]   ;;  %s125_s5 = smov 22   ;;  %v104_v11 = vld [vmem:[%s183_s0 + $0x9] sm:$0x1]   ;;  %s126_s10 = smov 7  }
   0x6   :  { %v103_v12 = vld [vmem:[%s183_s0 + $0x1] sm:$0x1]   ;;  %s127_s11 = smov 15   ;;  %v2_v13 = vld [vmem:[%s183_s0] sm:$0x1]   ;;  %vm22_vm4 = vcmask 982856  }
   0x7   :  { %4 = vst.msk [vmem:[#allocation0] sm:$0x1] %vm3_vm1, %v2_v13   ;;  %vm28_vm5 = vcmask 859856   ;;  %vm34_vm6 = vcmask 736856   ;;  %vm40_vm7 = vcmask 613856   ;;  %vm46_vm8 = vcmask 490856  }
   0x8   :  { %vm59_vm9 = vcmask 367856   ;;  %vm52_vm10 = vcmask 425256   ;;  %vm65_vm11 = vcmask 302256   ;;  %vm78_vm12 = vcmask 179256  }
   0x9   :  { %vm72_vm13 = vcmask 244856  }
   0xa   :  { %32 = vrot.lane.b32.xlu1 %v97_v5, %s120_s21 }
   0xb   :  { %44 = vrot.lane.b32.xlu2 %v99_v7, %s122_s25 }
   0xc   :  { %20 = vrot.lane.b32.xlu0 %v95_v6, %s121_s24 }
  0x12   :  { %57 = vrot.lane.b32.xlu1 %v101_v8, %s123_s30 }
  0x13   :  { %63 = vrot.lane.b32.xlu2 %v102_v10, %s125_s5 }
  0x14   :  { %50 = vrot.lane.b32.xlu0 %v100_v9, %s124_s4 }
  0x1a   :  { %76 = vrot.lane.b32.xlu1 %v104_v11, %s126_s10 }
  0x1c   :  { %70 = vrot.lane.b32.xlu0 %v103_v12, %s127_s11 }
  0x5d   :  { %v39_v14 = vpop.permute.xlu2 %38  }
  0x65   :  { %v45_v15 = vpop.permute.xlu2 %44  }
  0x6d   :  { %v64_v16 = vpop.permute.xlu2 %63  }
  0x74   :  { %v27_v17 = vpop.permute.xlu1 %26  }
  0x76   :  { %v12_v18 = vpop.permute.xlu0 %11  }
  0x77   :  { %15 = vst.msk [vmem:[#allocation0 + $0x8] sm:$0x1] %vm13_vm2, %v12_v18  }
  0x78   :  { %17 = vst.msk [vmem:[#allocation0] sm:$0x1] %vm16_vm3, %v12_v18  }
  0x7c   :  { %v33_v19 = vpop.permute.xlu1 %32  }
  0x7e   :  { %v21_v20 = vpop.permute.xlu0 %20  }
  0x7f   :  { %23 = vst.msk [vmem:[#allocation0] sm:$0x1] %vm22_vm4, %v21_v20  }
  0x80   :  { %29 = vst.msk [vmem:[#allocation0] sm:$0x1] %vm28_vm5, %v27_v17  }
  0x81   :  { %35 = vst.msk [vmem:[#allocation0] sm:$0x1] %vm34_vm6, %v33_v19  }
  0x82   :  { %41 = vst.msk [vmem:[#allocation0] sm:$0x1] %vm40_vm7, %v39_v14  }
  0x83   :  { %47 = vst.msk [vmem:[#allocation0] sm:$0x1] %vm46_vm8, %v45_v15  }
  0x84   :  { %v58_v21 = vpop.permute.xlu1 %57  }
  0x85   :  { %60 = vst.msk [vmem:[#allocation0] sm:$0x1] %vm59_vm9, %v58_v21  }
  0x86   :  { %v51_v22 = vpop.permute.xlu0 %50  }
  0x87   :  { %54 = vst.msk [vmem:[#allocation0 + $0x8] sm:$0x1] %vm52_vm10, %v51_v22  }
  0x88   :  { %67 = vst.msk [vmem:[#allocation0 + $0x8] sm:$0x1] %vm65_vm11, %v64_v16  }
  0x8c   :  { %v77_v23 = vpop.permute.xlu1 %76  }
  0x8d   :  { %80 = vst.msk [vmem:[#allocation0 + $0x8] sm:$0x1] %vm78_vm12, %v77_v23  }
  0x8e   :  { %v71_v24 = vpop.permute.xlu0 %70  }
  0x8f   :  { %73 = vst.msk [vmem:[#allocation0] sm:$0x1] %vm72_vm13, %v71_v24  }
  0x94   :  { %v88_v25 = vld [vmem:[#allocation0 + $0x8] sm:$0x1] }
  0x95   :  { %105 = vst [vmem:[%s184_s1 + $0x1] sm:$0x1] %v88_v25 }
  0x96   :  { %v83_v26 = vld [vmem:[#allocation0] sm:$0x1] }
  0x97   :  { %86 = vst [vmem:[%s184_s1] sm:$0x1] %v83_v26 }

// kernel: tile.18
= control target key start
LH: loop header
LB: loop body
LE: loop exit
PB: predicated region body
PF: predicated region fallthrough
CT: control target
= control target key end

     0   :  { %s22_s0 = inlined_call_operand.vmem [shape: f32[30], index: 0, kind: input, shape index: {}]   ;;  %s23_s1 = inlined_call_operand.vmem [shape: f32[4,30], index: 1, kind: output, shape index: {}]  }
   0x1   :  { %v4_v0 = vld [vmem:[%s22_s0] ss:$0 sm:$0xff] }
   0x2   :  { %5 = vst [vmem:[%s23_s1] sm:$0xf] %v4_v0 }

// kernel: tile.19
= control target key start
LH: loop header
LB: loop body
LE: loop exit
PB: predicated region body
PF: predicated region fallthrough
CT: control target
= control target key end

     0   :  { %s37_s8 = smov 30   ;;  %s38_s9 = smov 60   ;;  %vm7_vm0 = vcmask 244736   ;;  %vm13_vm1 = vcmask 982736   ;;  %vm19_vm2 = vcmask 736736   ;;  %vm25_vm3 = vcmask 490736   ;;  %s55_s0 = inlined_call_operand.vmem [shape: f32[4,30], index: 0, kind: input, shape index: {}]   ;;  %s56_s1 = inlined_call_operand.vmem [shape: f32[1,120], index: 1, kind: output, shape index: {}]  }
   0x1   :  { %v4_v0 = vld [vmem:[%s55_s0] sm:$0xf]  ;;  %s36_s0 = smov 90  }
   0x2   :  { %5 = vst [vmem:[#allocation1] sm:$0xf] %v4_v0 }
   0x9   :  { %v10_v1 = vld [vmem:[#allocation1 + $0x3] sm:$0x1]   ;;  %v22_v2 = vld [vmem:[#allocation1 + $0x1] sm:$0x1]   ;;  %v16_v3 = vld [vmem:[#allocation1 + $0x2] sm:$0x1]  }
   0xa   :  { %11 = vrot.lane.b32.xlu0 %v10_v1, %s36_s0  ;;  %23 = vrot.lane.b32.xlu1 %v22_v2, %s37_s8  ;;  %v6_v4 = vld [vmem:[#allocation1] sm:$0x1]  }
   0xb   :  { %8 = vst.msk [vmem:[#allocation0] sm:$0x1] %vm7_vm0, %v6_v4  }
  0x12   :  { %17 = vrot.lane.b32.xlu0 %v16_v3, %s38_s9 }
  0x7c   :  { %v12_v5 = vpop.permute.xlu0 %11   ;;  %v24_v6 = vpop.permute.xlu1 %23  }
  0x7d   :  { %14 = vst.msk [vmem:[#allocation0] sm:$0x1] %vm13_vm1, %v12_v5  }
  0x84   :  { %v18_v7 = vpop.permute.xlu0 %17  }
  0x85   :  { %20 = vst.msk [vmem:[#allocation0] sm:$0x1] %vm19_vm2, %v18_v7  }
  0x86   :  { %26 = vst.msk [vmem:[#allocation0] sm:$0x1] %vm25_vm3, %v24_v6  }
  0x8d   :  { %v29_v8 = vld [vmem:[#allocation0] sm:$0x1] }
  0x8e   :  { %32 = vst [vmem:[%s56_s1] sm:$0x1] %v29_v8 }

// kernel: base_model_forward.1
= control target key start
LH: loop header
LB: loop body
LE: loop exit
PB: predicated region body
PF: predicated region fallthrough
CT: control target
= control target key end

     0   :  { %s5868_s0 = inlined_call_operand.vmem [shape: bf16[2,28,28], index: 0, kind: input, shape index: {}]   ;;  %s5869_s1 = inlined_call_operand.vmem [shape: bf16[5,24,28], index: 1, kind: input, shape index: {}]   ;;  %s5870_s2 = inlined_call_operand.vmem [shape: bf16[10,28,180], index: 2, kind: input, shape index: {}]   ;;  %s5871_s3 = inlined_call_operand.vmem [shape: f32[1,180], index: 3, kind: input, shape index: {}]   ;;  %s5872_s4 = inlined_call_operand.vmem [shape: bf16[5,8,12], index: 4, kind: input, shape index: {}]   ;;  %s5873_s5 = inlined_call_operand.vmem [shape: bf16[10,180,120], index: 5, kind: input, shape index: {}]   ;;  %s5874_s6 = inlined_call_operand.vmem [shape: f32[1,120], index: 6, kind: input, shape index: {}]   ;;  %s5875_s7 = inlined_call_operand.vmem [shape: bf16[4,120,64], index: 7, kind: input, shape index: {}]   ;;  %s5876_s8 = inlined_call_operand.vmem [shape: f32[1,64], index: 8, kind: input, shape index: {}]   ;;  %s5877_s9 = inlined_call_operand.vmem [shape: bf16[64,10], index: 9, kind: input, shape index: {}]   ;;  %s5878_s10 = inlined_call_operand.vmem [shape: f32[1,10], index: 10, kind: input, shape index: {}]   ;;  %s5879_s11 = inlined_call_operand.hbm [shape: f32[2,1,10], index: 11, kind: output, shape index: {}]  }
   0x1   :  { %5880 = sst [smem:[#allocation5_spill]] %s5868_s0 }
   0x2   :  { %16 = vsyncpa [#allocation3], 0 }
   0x3   :  { %18 = vsyncpa [#allocation3 + $0x1], 0  ;;  %s4742_s17 = smov 0   ;;  %s4744_s18 = smov 0  }
   0x4   :  { %s4746_s19 = smov 0   ;;  %s4748_s20 = smov 0  }
   0x5 LB: > { %s4763_s21 = sadd.s32 4294967295, %s4680_s20   ;;  %s3241_s22 = sadd.s32 4294967294, %s4680_s20   ;;  %s4680_s20 = sphi %s4748_s20, %s5887_s20   ;;  %s4676_s19 = sphi %s4746_s19, %s5886_s19   ;;  %s4672_s18 = sphi %s4744_s18, %s5885_s18   ;;  %s4668_s17 = sphi %s4742_s17, %s5884_s17  }
   0x6   : > { %s4767_s23 = sadd.s32 1, %s4680_s20   ;;  %s267_s24 = sadd.s32 1, %s4676_s19 }
   0x7   : > { %s264_s25 = ssub.s32 %s4680_s20, %s4767_s23  ;;  %p277_p0 = scmp.ne.s32.totalorder %s4676_s19, %s4672_s18 }
   0x8   : > { %p265_p1 = scmp.eq.s32.totalorder %s264_s25, 0  ;;  %p278_p2 = scmp.eq.s32.totalorder %s4763_s21, 1 }
   0x9   : > { %p283_p3 = scmp.ne.s32.totalorder %s4672_s18, %s4668_s17  ;;  %p284_p4 = scmp.eq.s32.totalorder %s3241_s22, 1 }
   0xa   : > { %s4778_s26 = scalar_select %p265_p1, %s4676_s19, %s267_s24  }
   0xb   : > { %p4780_p5 = por %p278_p2, %p277_p0  ;;  %p4784_p6 = por %p284_p4, %p283_p3 }
   0xc   : > { %p3244_p7 = scmp.ge.s32.totalorder %s4680_s20, 1  ;;  %p340_p8 = scmp.lt.s32.totalorder %s4680_s20, 3 }
   0xe   : > { %p341_p9 = pnand %p3244_p7, %p340_p8 }
   0xf   : > { %p379_p10 = scmp.lt.s32.totalorder (!%p341_p9), %s4763_s21, 1  ;;  %s5883_s0 = sld [smem:[#allocation5_spill]] (!%p341_p9) }
  0x10   : > { %344 = sbr.rel (%p341_p9) target bundleno = 1370 (0x55a), region = 64  ;;  %s3182_s13 = scalar_lea.hbm (!%p341_p9), %s5879_s11, %s4763_s21 }
  0x11   : > { %s3186_s16 = sshll.u32 (!%p341_p9), %s3182_s13, 4  ;;  %s3187_s16 = int_to_ptr.hbm [resolvable:$true] %s3186_s16 }
  0x12   : > { %s4632_s24 = sshra.s32 (!%p341_p9), %s3187_s16, 4  ;;  %s4633_s24 = int_to_ptr.hbm [resolvable:$true] %s4632_s24 }
  0x13   : > { %s4634_s25 = scalar_lea.hbm (!%p341_p9), %s4633_s24, 1  ;;  %p4639_p0 = scmp.lt.s32.totalorder (!%p341_p9), %s4633_s24, %s5879_s11 }
  0x14   : > { %p4635_p11 = scmp.ne.s32.totalorder (!%p341_p9), %s4633_s24, %s4634_s25 }
  0x15   : > { %s380_s29 = scalar_select %p379_p10, %s4763_s21, 1  ;;  %vm418_vm0 = vcmask 1045504   ;;  %v4387_v5 = vld [vmem:[%s5869_s1] sm:$0xff]  ;;  %v4388_v6 = vld [vmem:[%s5869_s1 + $0xc] sm:$0xff]  ;;  %vm411_vm1 = vcmask 228352   ;;  %v4389_v8 = vld [vmem:[%s5869_s1 + $0x18] sm:$0xff] }
  0x16   : > { %v4390_v7 = vld [vmem:[%s5869_s1 + $0x24] sm:$0xff]  ;;  %v3263_v10 = vld [vmem:[%s5869_s1 + $0x14] sm:$0xf]  ;;  %v3281_v11 = vld [vmem:[%s5869_s1 + $0x2c] sm:$0xf]  ;;  %vm1319_vm2 = vcmask 1043456   ;;  %p4636_p12 = pnand %p4635_p11, %p4780_p5 }
  0x17   : > { %s4384_s30 = sshll.u32 %s380_s29, 4  ;;  %v391_v9 = vld [vmem:[%s5869_s1 + $0x8] sm:$0xf]  ;;  %v3272_v12 = vld [vmem:[%s5869_s1 + $0x20] sm:$0xf]  ;;  %v451_v14 = vunpack.c.l.b16 %v3263_v10  ;;  %v527_v15 = vunpack.c.l.b16 %v3281_v11  ;;  %v4391_v21 = vld [vmem:[%s5869_s1 + $0x30] sm:$0xff] }
  0x18   : > { %s383_s14 = scalar_lea.vmem %s5883_s0, %s4384_s30  ;;  %v397_v13 = vunpack.c.l.b16 %v391_v9  ;;  %v489_v16 = vunpack.c.l.b16 %v3272_v12  ;;  %v3290_v22 = vld [vmem:[%s5869_s1 + $0x38] sm:$0xf]  ;;  %v3311_v25 = vld [vmem:[%s5870_s2 + $0x30] sm:$0xf]  ;;  %v4398_v27 = vld [vmem:[%s5870_s2 + $0x34] sm:$0xf]  ;;  %p4637_p13 = pneg %p4636_p12 }
  0x19   : > { %v3257_v0 = vld [vmem:[%s383_s14 + $0x8] sm:$0xf]  ;;  %v4386_v1 = vld [vmem:[%s383_s14 + $0x8] sm:$0x30]  ;;  %v4385_v4 = vld [vmem:[%s383_s14] sm:$0xff]  ;;  %v453_v18 = vpack.c.b16 %v451_v14, %v451_v14  ;;  %v529_v19 = vpack.c.b16 %v527_v15, %v527_v15  ;;  %v565_v23 = vunpack.c.l.b16 %v3290_v22  ;;  %vm1351_vm3 = vcmask 97280  }
  0x1a   : > { %v3258_v2 = vor.u32 %v4386_v1, %v3257_v0  ;;  %v399_v17 = vpack.c.b16 %v397_v13, %v397_v13  ;;  %v491_v20 = vpack.c.b16 %v489_v16, %v489_v16  ;;  %v4399_v26 = vld [vmem:[%s5870_s2 + $0x34] sm:$0x30]  ;;  %v3313_v29 = vld [vmem:[%s5870_s2 + $0x38] sm:$0x30]  ;;  %v3331_v30 = vld [vmem:[%s5870_s2 + $0x10] sm:$0xf] }
  0x1b   : > { %v567_v24 = vpack.c.b16 %v565_v23, %v565_v23  ;;  %v3312_v28 = vor.u32 %v4399_v26, %v3311_v25  ;;  %v4395_v31 = vld [vmem:[%s5870_s2 + $0x14] sm:$0x30]  ;;  %v3316_v32 = vor.u32 %v4398_v27, %v3313_v29  ;;  %v4394_v34 = vld [vmem:[%s5870_s2 + $0x14] sm:$0xf]  ;;  %v3333_v35 = vld [vmem:[%s5870_s2 + $0x18] sm:$0x30] }
  0x1c   : > { %v420_v3 = vsel %vm418_vm0, %v3258_v2, 0  ;;  %v3332_v33 = vor.u32 %v4395_v31, %v3331_v30  ;;  %v3336_v37 = vor.u32 %v4394_v34, %v3333_v35  ;;  %v3303_v41 = vld [vmem:[%s5870_s2 + $0x20] sm:$0xf]  ;;  %v4397_v42 = vld [vmem:[%s5870_s2 + $0x24] sm:$0xf0]  ;;  %vm1641_vm4 = vcmask 1041408  }
  0x1d   : > { %428 = vmatpush.bf16.msra.mxu0 %v420_v3  ;;  %466 = vmatpush.bf16.msra.mxu1 %v420_v3  ;;  %v628_v36 = vsel %vm418_vm0, %v3312_v28, 0  ;;  %v631_v38 = vsel %vm418_vm0, %v3316_v32, 0  ;;  %v3304_v43 = vor.u32 %v4397_v42, %v3303_v41  ;;  %v4396_v44 = vld [vmem:[%s5870_s2 + $0x24] sm:$0xf]  ;;  %v3305_v45 = vld [vmem:[%s5870_s2 + $0x28] sm:$0xf0] }
  0x1e   : > { %542 = vmatpush.bf16.msra.mxu3 %v420_v3  ;;  %504 = vmatpush.bf16.msra.mxu2 %v420_v3  ;;  %v694_v39 = vsel %vm418_vm0, %v3332_v33, 0  ;;  %v697_v40 = vsel %vm418_vm0, %v3336_v37, 0  ;;  %v3323_v46 = vld [vmem:[%s5870_s2] sm:$0xf]  ;;  %v3308_v47 = vor.u32 %v4396_v44, %v3305_v45  ;;  %v4393_v48 = vld [vmem:[%s5870_s2 + $0x4] sm:$0xf0] }
  0x1f   : > { %v4392_v49 = vld [vmem:[%s5870_s2 + $0x4] sm:$0xf]  ;;  %v3325_v50 = vld [vmem:[%s5870_s2 + $0x8] sm:$0xf0]  ;;  %v3324_v51 = vor.u32 %v4393_v48, %v3323_v46  ;;  %v3355_v53 = vld [vmem:[%s5870_s2 + $0x50] sm:$0xf] }
  0x20   : > { %v3328_v52 = vor.u32 %v4392_v49, %v3325_v50  ;;  %v4403_v54 = vld [vmem:[%s5870_s2 + $0x54] sm:$0x30]  ;;  %v4402_v55 = vld [vmem:[%s5870_s2 + $0x54] sm:$0xf]  ;;  %v3357_v57 = vld [vmem:[%s5870_s2 + $0x58] sm:$0x30] }
  0x21   : > { %429 = vmatpush.bf16.msra.mxu0 %v4385_v4  ;;  %467 = vmatpush.bf16.msra.mxu1 %v4385_v4  ;;  %v3356_v56 = vor.u32 %v4403_v54, %v3355_v53  ;;  %v3379_v58 = vld [vmem:[%s5870_s2 + $0x70] sm:$0xf]  ;;  %v4407_v59 = vld [vmem:[%s5870_s2 + $0x74] sm:$0x30]  ;;  %v3360_v60 = vor.u32 %v4402_v55, %v3357_v57  ;;  %v4406_v62 = vld [vmem:[%s5870_s2 + $0x74] sm:$0xf] }
  0x22   : > { %543 = vmatpush.bf16.msra.mxu3 %v4385_v4  ;;  %505 = vmatpush.bf16.msra.mxu2 %v4385_v4  ;;  %v3380_v61 = vor.u32 %v4407_v59, %v3379_v58  ;;  %v3381_v63 = vld [vmem:[%s5870_s2 + $0x78] sm:$0x30]  ;;  %v3347_v0 = vld [vmem:[%s5870_s2 + $0x40] sm:$0xf]  ;;  %v3349_v10 = vld [vmem:[%s5870_s2 + $0x48] sm:$0xf0] }
  0x23   : > { %v765_v1 = vsel %vm418_vm0, %v3356_v56, 0  ;;  %v3384_v2 = vor.u32 %v4406_v62, %v3381_v63  ;;  %v3371_v11 = vld [vmem:[%s5870_s2 + $0x60] sm:$0xf]  ;;  %v4405_v14 = vld [vmem:[%s5870_s2 + $0x64] sm:$0xf0]  ;;  %vm1637_vm5 = vcmask 424960  }
  0x24   : > { %3259 = vmatmul.msk.bf16.vlgmr.msra.gmra.mxu0 %vm411_vm1, %v4387_v5  ;;  %3268 = vmatmul.msk.bf16.vlgmr.msra.gmra.mxu1 %vm411_vm1, %v4388_v6  ;;  %v4404_v15 = vld [vmem:[%s5870_s2 + $0x64] sm:$0xf]  ;;  %v3372_v16 = vor.u32 %v4405_v14, %v3371_v11  ;;  %v3403_v35 = vld [vmem:[%s5870_s2 + $0x90] sm:$0xf]  ;;  %v4410_v37 = vld [vmem:[%s5870_s2 + $0x94] sm:$0xf] }
  0x25   : > { %580 = vmatpush.bf16.msrb.mxu0 %v420_v3  ;;  %3286 = vmatmul.msk.bf16.vlgmr.msra.gmra.mxu3 %vm411_vm1, %v4390_v7  ;;  %v4401_v3 = vld [vmem:[%s5870_s2 + $0x44] sm:$0xf0]  ;;  %v768_v7 = vsel %vm418_vm0, %v3360_v60, 0  ;;  %v845_v12 = vsel %vm418_vm0, %v3384_v2, 0  ;;  %v4419_v41 = vld [vmem:[%s5870_s2 + $0xd4] sm:$0x30] }
  0x26   : > { %3277 = vmatmul.msk.bf16.vlgmr.msra.gmra.mxu2 %vm411_vm1, %v4389_v8  ;;  %639 = vmatpush.bf16.msrb.mxu1 %v628_v36  ;;  %v842_v8 = vsel %vm418_vm0, %v3380_v61, 0  ;;  %v3348_v9 = vor.u32 %v4401_v3, %v3347_v0  ;;  %v4411_v36 = vld [vmem:[%s5870_s2 + $0x94] sm:$0x30]  ;;  %v4418_v44 = vld [vmem:[%s5870_s2 + $0xd4] sm:$0xf]  ;;  %vm2857_vm6 = vcmask 982016  }
  0x27   : > { %657 = vmatpush.bf16.msrb.mxu2 %v631_v38  ;;  %705 = vmatpush.bf16.msrb.mxu3 %v694_v39  ;;  %v3404_v38 = vor.u32 %v4411_v36, %v3403_v35  ;;  %v3405_v39 = vld [vmem:[%s5870_s2 + $0x98] sm:$0x30]  ;;  %v3395_v46 = vld [vmem:[%s5870_s2 + $0x80] sm:$0xf]  ;;  %v3397_v57 = vld [vmem:[%s5870_s2 + $0x88] sm:$0xf0] }
  0x28   : > { %v3408_v42 = vor.u32 %v4410_v37, %v3405_v39  ;;  %v3433_v45 = vld [vmem:[%s5870_s2 + $0xd8] sm:$0x30]  ;;  %v3423_v58 = vld [vmem:[%s5870_s2 + $0xc0] sm:$0xf]  ;;  %v4417_v61 = vld [vmem:[%s5870_s2 + $0xc4] sm:$0xf0] }
  0x29   : > { %581 = vmatpush.bf16.msrb.mxu0 %v4385_v4  ;;  %v4400_v4 = vld [vmem:[%s5870_s2 + $0x44] sm:$0xf]  ;;  %v919_v49 = vsel %vm418_vm0, %v3404_v38, 0  ;;  %v3436_v50 = vor.u32 %v4418_v44, %v3433_v45  ;;  %v3424_v63 = vor.u32 %v4417_v61, %v3423_v58  ;;  %v3425_v0 = vld [vmem:[%s5870_s2 + $0xc8] sm:$0xf0]  ;;  %vm3142_vm7 = vcmask 523264  }
  0x2a   : > { %640 = vmatpush.bf16.msrb.mxu1 %v3304_v43  ;;  %v3352_v13 = vor.u32 %v4400_v4, %v3349_v10  ;;  %v922_v54 = vsel %vm418_vm0, %v3408_v42, 0  ;;  %v4416_v62 = vld [vmem:[%s5870_s2 + $0xc4] sm:$0xf]  ;;  %v4415_v10 = vld [vmem:[%s5870_s2 + $0xb4] sm:$0x30]  ;;  %vm3159_vm8 = vcmask 73728  }
  0x2b   : > { %658 = vmatpush.bf16.msrb.mxu2 %v3308_v47  ;;  %706 = vmatpush.bf16.msrb.mxu3 %v3324_v51  ;;  %v4409_v51 = vld [vmem:[%s5870_s2 + $0x84] sm:$0xf0]  ;;  %v998_v59 = vsel %vm418_vm0, %v3436_v50, 0  ;;  %v4414_v11 = vld [vmem:[%s5870_s2 + $0xb4] sm:$0xf]  ;;  %s377_s29 = sand.u32 1, %s4672_s18  }
  0x2c   : > { %v3396_v56 = vor.u32 %v4409_v51, %v3395_v46  ;;  %v3475_v14 = vld [vmem:[%s5870_s2 + $0xf0] sm:$0xf]  ;;  %v4421_v36 = vld [vmem:[%s5870_s2 + $0xe4] sm:$0xf0]  ;;  %v4420_v37 = vld [vmem:[%s5870_s2 + $0xe4] sm:$0xf] }
  0x2d   : > { %723 = vmatpush.bf16.msra.mxu0 %v697_v40  ;;  %v3431_v40 = vld [vmem:[%s5870_s2 + $0xd0] sm:$0xf]  ;;  %v3469_v39 = vld [vmem:[%s5870_s2 + $0xe8] sm:$0xf0]  ;;  %v4426_v44 = vld [vmem:[%s5870_s2 + $0x114] sm:$0xf] }
  0x2e   : > { %776 = vmatpush.bf16.msra.mxu1 %v765_v1  ;;  %v3432_v43 = vor.u32 %v4419_v41, %v3431_v40  ;;  %v3428_v1 = vor.u32 %v4416_v62, %v3425_v0  ;;  %v3472_v40 = vor.u32 %v4420_v37, %v3469_v39  ;;  %v3501_v46 = vld [vmem:[%s5870_s2 + $0x118] sm:$0x30]  ;;  %v4430_v50 = vld [vmem:[%s5870_s2 + $0x134] sm:$0xf]  ;;  %v4425_v58 = vld [vmem:[%s5870_s2 + $0x104] sm:$0xf0] }
  0x2f   : > { %794 = vmatpush.bf16.msra.mxu2 %v768_v7  ;;  %853 = vmatpush.bf16.msra.mxu3 %v842_v8  ;;  %v3525_v51 = vld [vmem:[%s5870_s2 + $0x138] sm:$0x30]  ;;  %v3493_v61 = vld [vmem:[%s5870_s2 + $0x108] sm:$0xf0]  ;;  %v3515_v62 = vld [vmem:[%s5870_s2 + $0x120] sm:$0xf] }
  0x30   : > { %v995_v55 = vsel %vm418_vm0, %v3432_v43, 0  ;;  %v3499_v43 = vld [vmem:[%s5870_s2 + $0x110] sm:$0xf]  ;;  %s378_s14 = scalar_lea.vmem [#allocation2], %s377_s29  ;;  %s3174_s22 = scalar_lea.sflag [#allocation3], %s377_s29 }
  0x31   : > { %724 = vmatpush.bf16.msra.mxu0 %v3328_v52  ;;  %v4408_v52 = vld [vmem:[%s5870_s2 + $0x84] sm:$0xf]  ;;  %s3184_s15 = sshll.u32 %s378_s14, 4  ;;  %s4638_s30 = scalar_lea.hbm %s5879_s11, 2  ;;  %s3185_s15 = int_to_ptr.vmem [resolvable:$true] %s3184_s15 }
  0x32   : > { %777 = vmatpush.bf16.msra.mxu1 %v3348_v9  ;;  %v3400_v60 = vor.u32 %v4408_v52, %v3397_v57  ;;  %v3451_v9 = vld [vmem:[%s5870_s2 + $0xb0] sm:$0xf]  ;;  %v3491_v57 = vld [vmem:[%s5870_s2 + $0x100] sm:$0xf]  ;;  %p4640_p1 = scmp.lt.s32.totalorder %s4638_s30, %s4634_s25 }
  0x33   : > { %795 = vmatpush.bf16.msra.mxu2 %v3352_v13  ;;  %854 = vmatpush.bf16.msra.mxu3 %v3372_v16  ;;  %v3453_v13 = vld [vmem:[%s5870_s2 + $0xb8] sm:$0x30] }
  0x34   : > { %3260 = vmatmul.msk.bf16.gmra.mxu0 %vm411_vm1, %v399_v17  ;;  %3269 = vmatmul.msk.bf16.gmra.mxu1 %vm411_vm1, %v453_v18  ;;  %v3373_v17 = vld [vmem:[%s5870_s2 + $0x68] sm:$0xf0]  ;;  %v3456_v16 = vor.u32 %v4414_v11, %v3453_v13  ;;  %p4641_p2 = por %p4640_p1, %p4639_p0 }
  0x35   : > { %3287 = vmatmul.msk.bf16.gmra.mxu3 %vm411_vm1, %v529_v19  ;;  %v3376_v18 = vor.u32 %v4404_v15, %v3373_v17  ;;  %v4423_v15 = vld [vmem:[%s5870_s2 + $0xf4] sm:$0x30] }
  0x36   : > { %3278 = vmatmul.msk.bf16.gmra.mxu2 %vm411_vm1, %v491_v20  ;;  %v3476_v17 = vor.u32 %v4423_v15, %v3475_v14  ;;  %p4642_p3 = pnand %p4641_p2, %p4637_p13 }
  0x44   : > { %3295 = vmatmul.msk.bf16.vlgmr.msrb.gmra.mxu0 %vm411_vm1, %v4391_v21 }
  0x45   : > { %871 = vmatpush.bf16.msrb.mxu0 %v845_v12  ;;  %v3452_v12 = vor.u32 %v4415_v10, %v3451_v9 }
  0x49   : > { %872 = vmatpush.bf16.msrb.mxu0 %v3376_v18  ;;  %v4422_v18 = vld [vmem:[%s5870_s2 + $0xf4] sm:$0xf] }
  0x54   : > { %3296 = vmatmul.msk.bf16.gmra.mxu0 %vm411_vm1, %v567_v24 }
  0xa1   : > { %v431_v5 = vpop.f32.mrf.mxu0  ;;  %v469_v6 = vpop.f32.mrf.mxu1 }
  0xa8   : > { %v4940_v19 = vpop.f32.mrf.mxu3 }
  0xa9   : > { %v4942_v20 = vpop.f32.mrf.mxu2  ;;  %v433_v21 = vpop.f32.mrf.mxu0 }
  0xaa   : > { %v471_v22 = vpop.f32.mrf.mxu1  ;;  %v4944_v23 = vpack.c.bf16 %v433_v21, %v431_v5  ;;  %v1055_v21 = vsel %vm418_vm0, %v3452_v12, 0 }
  0xab   : > { %v4946_v24 = vpack.c.bf16 %v471_v22, %v469_v6 }
  0xac   : > { %3337 = vmatmul.msk.bf16.vlgmr.msrb.gmra.mxu3 %vm411_vm1, %v4944_v23  ;;  %3339 = vmatmul.msk.bf16.vlgmr.msra.gmra.mxu0 %vm411_vm1, %v4944_v23 }
  0xad   : > { %3317 = vmatmul.msk.bf16.vlgmr.msrb.gmra.mxu1 %vm411_vm1, %v4946_v24  ;;  %3319 = vmatmul.msk.bf16.vlgmr.msrb.gmra.mxu2 %vm411_vm1, %v4946_v24 }
  0xae   : > { %930 = vmatpush.bf16.msrb.mxu1 %v919_v49  ;;  %948 = vmatpush.bf16.msrb.mxu2 %v922_v54 }
  0xaf   : > { %1006 = vmatpush.bf16.msrb.mxu3 %v995_v55  ;;  %1024 = vmatpush.bf16.msra.mxu0 %v998_v59  ;;  %v4424_v59 = vld [vmem:[%s5870_s2 + $0x104] sm:$0xf] }
  0xb0   : > { %v547_v25 = vpop.f32.mrf.mxu3  ;;  %v3496_v0 = vor.u32 %v4424_v59, %v3493_v61 }
  0xb1   : > { %v509_v26 = vpop.f32.mrf.mxu2  ;;  %v436_v27 = vpop.f32.mrf.mxu0  ;;  %v5026_v4 = vpack.c.bf16 %v547_v25, %v4940_v19  ;;  %v3477_v19 = vld [vmem:[%s5870_s2 + $0xf8] sm:$0x30]  ;;  %v4413_v25 = vld [vmem:[%s5870_s2 + $0xa4] sm:$0xf0] }
  0xb2   : > { %v474_v28 = vpop.f32.mrf.mxu1  ;;  %v4958_v32 = vpack.c.bf16 %v436_v27, %v436_v27  ;;  %931 = vmatpush.bf16.msrb.mxu1 %v3396_v56  ;;  %949 = vmatpush.bf16.msrb.mxu2 %v3400_v60  ;;  %v5023_v3 = vpack.c.bf16 %v509_v26, %v4942_v20  ;;  %v3443_v20 = vld [vmem:[%s5870_s2 + $0xa0] sm:$0xf]  ;;  %v3480_v22 = vor.u32 %v4422_v18, %v3477_v19  ;;  %v4412_v26 = vld [vmem:[%s5870_s2 + $0xa4] sm:$0xf]  ;;  %v1058_v27 = vsel %vm418_vm0, %v3456_v16, 0 }
  0xb3   : > { %v4956_v29 = vpack.c.bf16 %v474_v28, %v474_v28  ;;  %1007 = vmatpush.bf16.msrb.mxu3 %v3424_v63  ;;  %1025 = vmatpush.bf16.msra.mxu0 %v3428_v1  ;;  %v1120_v28 = vsel %vm418_vm0, %v3476_v17, 0  ;;  %v3492_v60 = vor.u32 %v4425_v58, %v3491_v57  ;;  %v4429_v63 = vld [vmem:[%s5870_s2 + $0x124] sm:$0xf0] }
  0xb4   : > { %v3516_v1 = vor.u32 %v4429_v63, %v3515_v62 }
  0xb8   : > { %v550_v30 = vpop.f32.mrf.mxu3 }
  0xb9   : > { %v512_v31 = vpop.f32.mrf.mxu2  ;;  %v438_v33 = vpop.f32.mrf.mxu0  ;;  %v5038_v7 = vpack.c.bf16 %v550_v30, %v550_v30  ;;  %v3444_v30 = vor.u32 %v4413_v25, %v3443_v20 }
  0xba   : > { %v476_v34 = vpop.f32.mrf.mxu1  ;;  %v5036_v6 = vpack.c.bf16 %v512_v31, %v512_v31  ;;  %v3445_v31 = vld [vmem:[%s5870_s2 + $0xa8] sm:$0xf0]  ;;  %v3467_v33 = vld [vmem:[%s5870_s2 + $0xe0] sm:$0xf] }
  0xbb   : > { %v1123_v34 = vsel %vm418_vm0, %v3480_v22, 0  ;;  %v3448_v35 = vor.u32 %v4412_v26, %v3445_v31  ;;  %v3468_v38 = vor.u32 %v4421_v36, %v3467_v33 }
  0xbc   : > { %3338 = vmatmul.msk.bf16.gmra.mxu3 %vm411_vm1, %v4958_v32  ;;  %3340 = vmatmul.msk.bf16.gmra.mxu0 %vm411_vm1, %v4958_v32 }
  0xbd   : > { %3318 = vmatmul.msk.bf16.gmra.mxu1 %vm411_vm1, %v4956_v29  ;;  %3320 = vmatmul.msk.bf16.gmra.mxu2 %vm411_vm1, %v4956_v29 }
  0xc0   : > { %v552_v47 = vpop.f32.mrf.mxu3 }
  0xc1   : > { %v514_v48 = vpop.f32.mrf.mxu2  ;;  %v5002_v53 = vpop.f32.mrf.mxu0  ;;  %v4431_v47 = vld [vmem:[%s5870_s2 + $0x134] sm:$0x30] }
  0xc2   : > { %v3504_v48 = vor.u32 %v4426_v44, %v3501_v46 }
  0xc4   : > { %v1194_v54 = vsel %vm418_vm0, %v3504_v48, 0 }
  0xc9   : > { %v585_v2 = vpop.f32.mrf.mxu0 }
  0xca   : > { %v592_v41 = vpack.c.bf16 %v585_v2, %v5002_v53  ;;  %v3528_v53 = vor.u32 %v4430_v50, %v3525_v51  ;;  %v4428_v2 = vld [vmem:[%s5870_s2 + $0x124] sm:$0xf] }
  0xcc   : > { %3385 = vmatmul.msk.bf16.vlgmr.msra.gmra.mxu3 %vm411_vm1, %v5026_v4  ;;  %3387 = vmatmul.msk.bf16.vlgmr.msrb.gmra.mxu0 %vm411_vm1, %v5026_v4  ;;  %v1265_v56 = vsel %vm418_vm0, %v3528_v53, 0 }
  0xcd   : > { %3361 = vmatmul.msk.bf16.vlgmr.msra.gmra.mxu1 %vm411_vm1, %v5023_v3  ;;  %3363 = vmatmul.msk.bf16.vlgmr.msra.gmra.mxu2 %vm411_vm1, %v5023_v3 }
  0xce   : > { %1066 = vmatpush.bf16.msra.mxu1 %v1055_v21  ;;  %1084 = vmatpush.bf16.msra.mxu2 %v1058_v27 }
  0xcf   : > { %1131 = vmatpush.bf16.msra.mxu3 %v1120_v28  ;;  %1149 = vmatpush.bf16.msrb.mxu0 %v1123_v34 }
  0xd1   : > { %v588_v5 = vpop.f32.mrf.mxu0 }
  0xd2   : > { %1067 = vmatpush.bf16.msra.mxu1 %v3444_v30  ;;  %1085 = vmatpush.bf16.msra.mxu2 %v3448_v35  ;;  %v5107_v42 = vpack.c.bf16 %v588_v5, %v588_v5  ;;  %v3517_v5 = vld [vmem:[%s5870_s2 + $0x128] sm:$0xf0] }
  0xd3   : > { %1132 = vmatpush.bf16.msra.mxu3 %v3468_v38  ;;  %1150 = vmatpush.bf16.msrb.mxu0 %v3472_v40 }
  0xd9   : > { %v590_v8 = vpop.f32.mrf.mxu0 }
  0xda   : > { %v3520_v8 = vor.u32 %v4428_v2, %v3517_v5 }
  0xdc   : > { %3386 = vmatmul.msk.bf16.gmra.mxu3 %vm411_vm1, %v5038_v7  ;;  %3388 = vmatmul.msk.bf16.gmra.mxu0 %vm411_vm1, %v5038_v7 }
  0xdd   : > { %3362 = vmatmul.msk.bf16.gmra.mxu1 %vm411_vm1, %v5036_v6  ;;  %3364 = vmatmul.msk.bf16.gmra.mxu2 %vm411_vm1, %v5036_v6 }
  0xec   : > { %3437 = vmatmul.msk.bf16.vlgmr.msrb.gmra.mxu3 %vm411_vm1, %v4946_v24  ;;  %3439 = vmatmul.msk.bf16.vlgmr.msra.gmra.mxu0 %vm411_vm1, %v4946_v24  ;;  %v4427_v24 = vld [vmem:[%s5870_s2 + $0x114] sm:$0x30] }
  0xed   : > { %3409 = vmatmul.msk.bf16.vlgmr.msrb.gmra.mxu1 %vm411_vm1, %v592_v41  ;;  %3411 = vmatmul.msk.bf16.vlgmr.msrb.gmra.mxu2 %vm411_vm1, %v592_v41  ;;  %v3500_v45 = vor.u32 %v4427_v24, %v3499_v43 }
  0xee   : > { %1220 = vmatpush.bf16.msrb.mxu2 %v1194_v54  ;;  %1291 = vmatpush.bf16.msra.mxu0 %v1265_v56 }
  0xef   : > { %v1191_v52 = vsel %vm418_vm0, %v3500_v45, 0 }
  0xf0   : > { %1202 = vmatpush.bf16.msrb.mxu1 %v1191_v52 }
  0xf2   : > { %1221 = vmatpush.bf16.msrb.mxu2 %v3496_v0  ;;  %1292 = vmatpush.bf16.msra.mxu0 %v3520_v8 }
  0xf4   : > { %1203 = vmatpush.bf16.msrb.mxu1 %v3492_v60 }
  0xfc   : > { %3438 = vmatmul.msk.bf16.gmra.mxu3 %vm411_vm1, %v4956_v29  ;;  %3440 = vmatmul.msk.bf16.gmra.mxu0 %vm411_vm1, %v4956_v29  ;;  %v3523_v29 = vld [vmem:[%s5870_s2 + $0x130] sm:$0xf] }
  0xfd   : > { %3410 = vmatmul.msk.bf16.gmra.mxu1 %vm411_vm1, %v5107_v42  ;;  %3412 = vmatmul.msk.bf16.gmra.mxu2 %vm411_vm1, %v5107_v42  ;;  %v3524_v49 = vor.u32 %v4431_v47, %v3523_v29 }
  0xff   : > { %v1262_v55 = vsel %vm418_vm0, %v3524_v49, 0 }
 0x100   : > { %1273 = vmatpush.bf16.msrb.mxu3 %v1262_v55 }
 0x104   : > { %1274 = vmatpush.bf16.msrb.mxu3 %v3516_v1 }
 0x10c   : > { %3481 = vmatmul.msk.bf16.vlgmr.msra.gmra.mxu3 %vm411_vm1, %v5023_v3  ;;  %3483 = vmatmul.msk.bf16.vlgmr.msrb.gmra.mxu0 %vm411_vm1, %v5023_v3 }
 0x10d   : > { %3457 = vmatmul.msk.bf16.vlgmr.msra.gmra.mxu1 %vm411_vm1, %v4944_v23  ;;  %3459 = vmatmul.msk.bf16.vlgmr.msra.gmra.mxu2 %vm411_vm1, %v4944_v23 }
 0x11c   : > { %3482 = vmatmul.msk.bf16.gmra.mxu3 %vm411_vm1, %v5036_v6  ;;  %3484 = vmatmul.msk.bf16.gmra.mxu0 %vm411_vm1, %v5036_v6 }
 0x11d   : > { %3458 = vmatmul.msk.bf16.gmra.mxu1 %vm411_vm1, %v4958_v32  ;;  %3460 = vmatmul.msk.bf16.gmra.mxu2 %vm411_vm1, %v4958_v32 }
 0x129   : > { %v726_v9 = vpop.f32.mrf.mxu0 }
 0x12a   : > { %v642_v23 = vpop.f32.mrf.mxu1 }
 0x12c   : > { %3529 = vmatmul.msk.bf16.vlgmr.msrb.gmra.mxu3 %vm411_vm1, %v592_v41  ;;  %3531 = vmatmul.msk.bf16.vlgmr.msra.gmra.mxu0 %vm411_vm1, %v592_v41 }
 0x12d   : > { %3505 = vmatmul.msk.bf16.vlgmr.msrb.gmra.mxu1 %vm411_vm1, %v5026_v4  ;;  %3507 = vmatmul.msk.bf16.vlgmr.msrb.gmra.mxu2 %vm411_vm1, %v5026_v4 }
 0x12f   : > { %v708_v10 = vpop.f32.mrf.mxu3 }
 0x130   : > { %v660_v3 = vpop.f32.mrf.mxu2  ;;  %v709_v11 = vadd.f32 %v708_v10, %v642_v23 }
 0x131   : > { %v727_v32 = vadd.f32 %v726_v9, %v660_v3  ;;  %v5193_v13 = vpop.f32.mrf.mxu0 }
 0x132   : > { %v5191_v12 = vpop.f32.mrf.mxu1 }
 0x137   : > { %v5197_v14 = vpop.f32.mrf.mxu3 }
 0x138   : > { %v5195_v6 = vpop.f32.mrf.mxu2 }
 0x139   : > { %v731_v16 = vpop.f32.mrf.mxu0 }
 0x13a   : > { %v647_v15 = vpop.f32.mrf.mxu1 }
 0x13c   : > { %3530 = vmatmul.msk.bf16.gmra.mxu3 %vm411_vm1, %v5107_v42  ;;  %3532 = vmatmul.msk.bf16.gmra.mxu0 %vm411_vm1, %v5107_v42 }
 0x13d   : > { %3506 = vmatmul.msk.bf16.gmra.mxu1 %vm411_vm1, %v5038_v7  ;;  %3508 = vmatmul.msk.bf16.gmra.mxu2 %vm411_vm1, %v5038_v7 }
 0x13f   : > { %v713_v18 = vpop.f32.mrf.mxu3 }
 0x140   : > { %v665_v4 = vpop.f32.mrf.mxu2  ;;  %v714_v19 = vadd.f32 %v713_v18, %v647_v15 }
 0x141   : > { %v732_v17 = vadd.f32 %v731_v16, %v665_v4  ;;  %v733_v21 = vpop.f32.mrf.mxu0 }
 0x142   : > { %v649_v20 = vpop.f32.mrf.mxu1 }
 0x147   : > { %v715_v25 = vpop.f32.mrf.mxu3 }
 0x148   : > { %v667_v22 = vpop.f32.mrf.mxu2 }
 0x149   : > { %v874_v28 = vpop.f32.mrf.mxu0 }
 0x14a   : > { %v779_v26 = vpop.f32.mrf.mxu1 }
 0x14b   : > { %v806_v27 = vadd.f32 %v779_v26, %v709_v11 }
 0x14f   : > { %v856_v7 = vpop.f32.mrf.mxu3 }
 0x150   : > { %v797_v30 = vpop.f32.mrf.mxu2  ;;  %v883_v33 = vadd.f32 %v856_v7, %v806_v27 }
 0x151   : > { %v807_v31 = vadd.f32 %v797_v30, %v727_v32  ;;  %v5209_v35 = vpop.f32.mrf.mxu0 }
 0x152   : > { %v5207_v34 = vpop.f32.mrf.mxu1 }
 0x153   : > { %v884_v36 = vadd.f32 %v874_v28, %v807_v31 }
 0x157   : > { %v5213_v38 = vpop.f32.mrf.mxu3 }
 0x158   : > { %v5211_v37 = vpop.f32.mrf.mxu2 }
 0x159   : > { %v879_v41 = vpop.f32.mrf.mxu0 }
 0x15a   : > { %v784_v39 = vpop.f32.mrf.mxu1 }
 0x15b   : > { %v810_v40 = vadd.f32 %v784_v39, %v714_v19 }
 0x15f   : > { %v861_v24 = vpop.f32.mrf.mxu3 }
 0x160   : > { %v802_v42 = vpop.f32.mrf.mxu2  ;;  %v887_v44 = vadd.f32 %v861_v24, %v810_v40 }
 0x161   : > { %v811_v43 = vadd.f32 %v802_v42, %v732_v17  ;;  %v881_v46 = vpop.f32.mrf.mxu0 }
 0x162   : > { %v786_v45 = vpop.f32.mrf.mxu1 }
 0x163   : > { %v888_v29 = vadd.f32 %v879_v41, %v811_v43 }
 0x167   : > { %v863_v48 = vpop.f32.mrf.mxu3 }
 0x168   : > { %v804_v47 = vpop.f32.mrf.mxu2  ;;  %v729_v48 = vadd.f32 %v5193_v13, %v5195_v6 }
 0x169   : > { %v1027_v51 = vpop.f32.mrf.mxu0 }
 0x16a   : > { %v933_v49 = vpop.f32.mrf.mxu1 }
 0x16b   : > { %v5215_v50 = vadd.f32 %v933_v49, %v883_v33 }
 0x16f   : > { %v1009_v54 = vpop.f32.mrf.mxu3 }
 0x170   : > { %v951_v52 = vpop.f32.mrf.mxu2 }
 0x171   : > { %v5217_v53 = vadd.f32 %v951_v52, %v884_v36  ;;  %v1029_v56 = vpop.f32.mrf.mxu0  ;;  %v711_v52 = vadd.f32 %v5197_v14, %v5191_v12 }
 0x172   : > { %v5219_v55 = vpop.f32.mrf.mxu1 }
 0x177   : > { %v1011_v58 = vpop.f32.mrf.mxu3 }
 0x178   : > { %v5221_v57 = vpop.f32.mrf.mxu2 }
 0x179   : > { %v1032_v61 = vpop.f32.mrf.mxu0 }
 0x17a   : > { %v938_v59 = vpop.f32.mrf.mxu1 }
 0x17b   : > { %v5223_v60 = vadd.f32 %v938_v59, %v887_v44 }
 0x17f   : > { %v1014_v0 = vpop.f32.mrf.mxu3 }
 0x180   : > { %v956_v62 = vpop.f32.mrf.mxu2 }
 0x181   : > { %v5225_v63 = vadd.f32 %v956_v62, %v888_v29  ;;  %v1034_v2 = vpop.f32.mrf.mxu0  ;;  %v809_v62 = vadd.f32 %v5211_v37, %v729_v48  ;;  %v4449_v48 = vld [vmem:[%s5873_s5 + $0x8c] sm:$0xff] }
 0x182   : > { %v940_v1 = vpop.f32.mrf.mxu1 }
 0x183   : > { %v886_v6 = vadd.f32 %v5209_v35, %v809_v62 }
 0x185   : > { %v963_v37 = vadd.f32 %v5221_v57, %v886_v6  ;;  %v4438_v6 = vld [vmem:[%s5873_s5 + $0x30] sm:$0xff] }
 0x187   : > { %v1016_v8 = vpop.f32.mrf.mxu3 }
 0x188   : > { %v958_v5 = vpop.f32.mrf.mxu2 }
 0x189   : > { %v1152_v9 = vpop.f32.mrf.mxu0 }
 0x18a   : > { %v1069_v23 = vpop.f32.mrf.mxu1 }
 0x18b   : > { %v1070_v30 = vadd.f32 %v1069_v23, %v1009_v54 }
 0x18f   : > { %v1134_v32 = vpop.f32.mrf.mxu3 }
 0x190   : > { %v1087_v3 = vpop.f32.mrf.mxu2  ;;  %v1161_v31 = vadd.f32 %v1134_v32, %v1070_v30 }
 0x191   : > { %v1154_v11 = vpop.f32.mrf.mxu0  ;;  %v1088_v27 = vadd.f32 %v1087_v3, %v1027_v51 }
 0x192   : > { %v1071_v10 = vpop.f32.mrf.mxu1 }
 0x193   : > { %v1162_v7 = vadd.f32 %v1152_v9, %v1088_v27  ;;  %v1072_v29 = vadd.f32 %v1071_v10, %v1011_v58 }
 0x197   : > { %v1136_v16 = vpop.f32.mrf.mxu3 }
 0x198   : > { %v1089_v15 = vpop.f32.mrf.mxu2  ;;  %v1163_v54 = vadd.f32 %v1136_v16, %v1072_v29  ;;  %v5259_v29 = vld [vmem:[%s5872_s4 + $0xc] sm:$0xf] }
 0x199   : > { %v1157_v17 = vpop.f32.mrf.mxu0  ;;  %v1090_v45 = vadd.f32 %v1089_v15, %v1029_v56  ;;  %v808_v56 = vadd.f32 %v5207_v34, %v711_v52  ;;  %v1543_v52 = vld [vmem:[%s5873_s5 + $0x58] sm:$0x3] }
 0x19a   : > { %v1074_v4 = vpop.f32.mrf.mxu1 }
 0x19b   : > { %v1164_v49 = vadd.f32 %v1154_v11, %v1090_v45  ;;  %v885_v5 = vadd.f32 %v5213_v38, %v808_v56  ;;  %v1334_v38 = vld [vmem:[%s5871_s3] sm:$0x3] }
 0x19c   : > { %v1336_v57 = vperm.slane %v1334_v38, 0 }
 0x19d   : > { %v962_v12 = vadd.f32 %v5219_v55, %v885_v5  ;;  %v4446_v5 = vld [vmem:[%s5873_s5 + $0x74] sm:$0xff] }
 0x19f   : > { %v1139_v19 = vpop.f32.mrf.mxu3 }
 0x1a0   : > { %v1092_v18 = vpop.f32.mrf.mxu2 }
 0x1a1   : > { %v1159_v21 = vpop.f32.mrf.mxu0  ;;  %v1093_v1 = vadd.f32 %v1092_v18, %v1032_v61 }
 0x1a2   : > { %v1076_v20 = vpop.f32.mrf.mxu1 }
 0x1a3   : > { %v1166_v9 = vadd.f32 %v1157_v17, %v1093_v1  ;;  %v1337_v20 = vperm.slane %v1334_v38, 1  ;;  %v4472_v38 = vld [vmem:[%s5873_s5 + $0x14c] sm:$0xff] }
 0x1a7   : > { %v1141_v25 = vpop.f32.mrf.mxu3 }
 0x1a8   : > { %v1094_v22 = vpop.f32.mrf.mxu2 }
 0x1a9   : > { %v1294_v28 = vpop.f32.mrf.mxu0 }
 0x1aa   : > { %v1205_v26 = vpop.f32.mrf.mxu1 }
 0x1ab   : > { %v1232_v33 = vadd.f32 %v1205_v26, %v1161_v31 }
 0x1af   : > { %v1276_v40 = vpop.f32.mrf.mxu3 }
 0x1b0   : > { %v1223_v36 = vpop.f32.mrf.mxu2  ;;  %v1303_v41 = vadd.f32 %v1276_v40, %v1232_v33 }
 0x1b1   : > { %v1233_v39 = vadd.f32 %v1223_v36, %v1162_v7  ;;  %v1296_v24 = vpop.f32.mrf.mxu0 }
 0x1b2   : > { %v1207_v42 = vpop.f32.mrf.mxu1  ;;  %v1309_v44 = vmax.f32 %v5215_v50, %v1303_v41 }
 0x1b3   : > { %v1304_v43 = vadd.f32 %v1294_v28, %v1233_v39  ;;  %v1234_v58 = vadd.f32 %v1207_v42, %v1163_v54  ;;  %v4448_v54 = vld [vmem:[%s5873_s5 + $0x84] sm:$0xff] }
 0x1b5   : > { %v1310_v46 = vmax.f32 %v5217_v53, %v1304_v43  ;;  %v1075_v53 = vadd.f32 %v1074_v4, %v1014_v0 }
 0x1b7   : > { %v1278_v51 = vpop.f32.mrf.mxu3  ;;  %v1165_v8 = vadd.f32 %v1139_v19, %v1075_v53  ;;  %v4439_v53 = vld [vmem:[%s5873_s5 + $0x38] sm:$0xff] }
 0x1b8   : > { %v1225_v47 = vpop.f32.mrf.mxu2  ;;  %v1305_v13 = vadd.f32 %v1278_v51, %v1234_v58 }
 0x1b9   : > { %v1235_v2 = vadd.f32 %v1225_v47, %v1164_v49  ;;  %v1299_v50 = vpop.f32.mrf.mxu0  ;;  %v4450_v47 = vld [vmem:[%s5873_s5 + $0x94] sm:$0xff] }
 0x1ba   : > { %v1210_v59 = vpop.f32.mrf.mxu1  ;;  %v1311_v10 = vmax.f32 %v962_v12, %v1305_v13  ;;  %v3569_v49 = vld [vmem:[%s5873_s5 + $0xb4] sm:$0x3]  ;;  %v3682_v12 = vld [vmem:[%s5873_s5 + $0x110] sm:$0x3] }
 0x1bb   : > { %v1306_v23 = vadd.f32 %v1296_v24, %v1235_v2  ;;  %v1236_v14 = vadd.f32 %v1210_v59, %v1165_v8  ;;  %v1613_v51 = vunpack.c.l.b16 %v3569_v49  ;;  %v1716_v59 = vunpack.c.l.b16 %v1543_v52  ;;  %v3538_v2 = vld [vmem:[%s5872_s4 + $0x8] sm:$0xf]  ;;  %v4453_v8 = vld [vmem:[%s5873_s5 + $0xac] sm:$0xff] }
 0x1bc   : > { %v1320_v4 = vrot.slane %v1311_v10, 4  ;;  %v4442_v13 = vld [vmem:[%s5873_s5 + $0x50] sm:$0xff] }
 0x1bd   : > { %v1312_v11 = vmax.f32 %v963_v37, %v1306_v23  ;;  %v1625_v62 = vpack.c.b16 %v1613_v51, %v1613_v51  ;;  %v1728_v1 = vpack.c.b16 %v1716_v59, %v1716_v59  ;;  %v4445_v23 = vld [vmem:[%s5873_s5 + $0x6c] sm:$0xff]  ;;  %v1841_v37 = vunpack.c.l.b16 %v3682_v12 }
 0x1bf   : > { %v1281_v32 = vpop.f32.mrf.mxu3  ;;  %v1323_v18 = vrot.slane %v1312_v11, 4  ;;  %v1643_v56 = vsel %vm1641_vm4, %v1625_v62, 0  ;;  %v1744_v58 = vsel %vm1641_vm4, %v1728_v1, 0  ;;  %v3818_v62 = vld [vmem:[%s5873_s5 + $0x1c8] sm:$0x3] }
 0x1c0   : > { %v1228_v3 = vpop.f32.mrf.mxu2  ;;  %v1307_v34 = vadd.f32 %v1281_v32, %v1236_v14  ;;  %v4441_v14 = vld [vmem:[%s5873_s5 + $0x48] sm:$0xff]  ;;  %v4451_v32 = vld [vmem:[%s5873_s5 + $0x9c] sm:$0xff] }
 0x1c1   : > { %v1237_v61 = vadd.f32 %v1228_v3, %v1166_v9  ;;  %v1301_v35 = vpop.f32.mrf.mxu0  ;;  %v4452_v9 = vld [vmem:[%s5873_s5 + $0xa4] sm:$0xff] }
 0x1c2   : > { %v1212_v0 = vpop.f32.mrf.mxu1  ;;  %v1313_v16 = vmax.f32 %v5223_v60, %v1307_v34  ;;  %v4437_v3 = vld [vmem:[%s5873_s5 + $0x28] sm:$0xff]  ;;  %v4436_v34 = vld [vmem:[%s5873_s5 + $0x20] sm:$0xff]  ;;  %v3544_v35 = vld [vmem:[%s5872_s4 + $0x10] sm:$0xf] }
 0x1c3   : > { %v1308_v15 = vadd.f32 %v1299_v50, %v1237_v61  ;;  %v4447_v50 = vld [vmem:[%s5873_s5 + $0x7c] sm:$0xff]  ;;  %v4444_v61 = vld [vmem:[%s5873_s5 + $0x64] sm:$0xff]  ;;  %v1853_v0 = vpack.c.b16 %v1841_v37, %v1841_v37 }
 0x1c4   : > { %v1321_v17 = vrot.slane %v1313_v16, 4  ;;  %v4435_v16 = vld [vmem:[%s5873_s5 + $0x18] sm:$0xff] }
 0x1c5   : > { %v1314_v55 = vmax.f32 %v5225_v63, %v1308_v15  ;;  %v4461_v15 = vld [vmem:[%s5873_s5 + $0xf0] sm:$0xff] }
 0x1c6   : > { %v1322_v21 = vsel %vm1319_vm2, %v1320_v4, %v1321_v17  ;;  %v1332_v22 = vmax.f32 %v1311_v10, %v1321_v17  ;;  %v4440_v10 = vld [vmem:[%s5873_s5 + $0x40] sm:$0xff]  ;;  %v4460_v4 = vld [vmem:[%s5873_s5 + $0xe8] sm:$0xff] }
 0x1c7   : > { %v1324_v19 = vrot.slane %v1314_v55, 4  ;;  %v1330_v28 = vmax.f32 %v1309_v44, %v1322_v21  ;;  %v1283_v30 = vpop.f32.mrf.mxu3  ;;  %v1350_v44 = vld [vmem:[%s5872_s4] sm:$0xf]  ;;  %v1869_v55 = vsel %vm1641_vm4, %v1853_v0, 0  ;;  %v4471_v17 = vld [vmem:[%s5873_s5 + $0x144] sm:$0xff] }
 0x1c8   : > { %v1230_v25 = vpop.f32.mrf.mxu2  ;;  %v1342_v60 = vadd.f32 %v1336_v57, %v1332_v22  ;;  %v4433_v21 = vld [vmem:[%s5873_s5 + $0x8] sm:$0xff]  ;;  %v4501_v0 = vld [vmem:[%s5873_s5 + $0x240] sm:$0xff] }
 0x1c9   : > { %v1325_v26 = vsel %vm1319_vm2, %v1323_v18, %v1324_v19  ;;  %v1333_v27 = vmax.f32 %v1312_v11, %v1324_v19  ;;  %v1340_v63 = vadd.f32 %v1336_v57, %v1330_v28  ;;  %v4443_v11 = vld [vmem:[%s5873_s5 + $0x5c] sm:$0xff]  ;;  %v3750_v57 = vld [vmem:[%s5873_s5 + $0x16c] sm:$0x3]  ;;  %v4434_v18 = vld [vmem:[%s5873_s5 + $0x10] sm:$0xff] }
 0x1ca   : > { %v1331_v31 = vmax.f32 %v1310_v46, %v1325_v26  ;;  %v1346_v33 = vmax.f32 %v1342_v60, 0.0  ;;  %v3535_v46 = vld [vmem:[%s5872_s4 + $0x4] sm:$0xf]  ;;  %v1967_v19 = vunpack.c.l.b16 %v3750_v57  ;;  %v4469_v25 = vld [vmem:[%s5873_s5 + $0x134] sm:$0xff]  ;;  %v4468_v28 = vld [vmem:[%s5873_s5 + $0x12c] sm:$0xff] }
 0x1cb   : > { %v1343_v7 = vadd.f32 %v1337_v20, %v1333_v27  ;;  %v1344_v40 = vmax.f32 %v1340_v63, 0.0  ;;  %v4432_v26 = vld [vmem:[%s5873_s5] sm:$0xff]  ;;  %v4464_v60 = vld [vmem:[%s5873_s5 + $0x108] sm:$0xff]  ;;  %v4022_v57 = vld [vmem:[%s5873_s5 + $0x2dc] sm:$0x3] }
 0x1cc   : > { %v1341_v36 = vadd.f32 %v1337_v20, %v1331_v31  ;;  %v4470_v20 = vld [vmem:[%s5873_s5 + $0x13c] sm:$0xff]  ;;  %v1979_v22 = vpack.c.b16 %v1967_v19, %v1967_v19  ;;  %v4475_v30 = vld [vmem:[%s5873_s5 + $0x164] sm:$0xff] }
 0x1cd   : > { %v1347_v39 = vmax.f32 %v1343_v7, 0.0  ;;  %v1348_v42 = vpack.c.bf16 %v1346_v33, %v1344_v40  ;;  %v4459_v31 = vld [vmem:[%s5873_s5 + $0xe0] sm:$0xff]  ;;  %v4458_v33 = vld [vmem:[%s5873_s5 + $0xd8] sm:$0xff] }
 0x1ce   : > { %v1345_v41 = vmax.f32 %v1341_v36, 0.0  ;;  %v1995_v27 = vsel %vm1641_vm4, %v1979_v22, 0  ;;  %v4467_v7 = vld [vmem:[%s5873_s5 + $0x124] sm:$0xff]  ;;  %v4474_v63 = vld [vmem:[%s5873_s5 + $0x15c] sm:$0xff]  ;;  %v4473_v40 = vld [vmem:[%s5873_s5 + $0x154] sm:$0xff] }
 0x1cf   : > { %v1356_v24 = vsel %vm418_vm0, %v1348_v42, 0  ;;  %v4463_v36 = vld [vmem:[%s5873_s5 + $0x100] sm:$0xff]  ;;  %v4462_v42 = vld [vmem:[%s5873_s5 + $0xf8] sm:$0xff]  ;;  %v4499_v22 = vld [vmem:[%s5873_s5 + $0x230] sm:$0xff] }
 0x1d0   : > { %v1349_v43 = vpack.c.bf16 %v1347_v39, %v1345_v41  ;;  %1368 = vmatpush.bf16.msra.mxu1 %v1356_v24  ;;  %1401 = vmatpush.bf16.msra.mxu3 %v1356_v24  ;;  %v4466_v39 = vld [vmem:[%s5873_s5 + $0x11c] sm:$0xff]  ;;  %v4457_v41 = vld [vmem:[%s5873_s5 + $0xd0] sm:$0xff] }
 0x1d1   : > { %1467 = vmatpush.bf16.msrb.mxu0 %v1356_v24 }
 0x1d2   : > { %v1359_v45 = vsel %vm418_vm0, %v1349_v43, 0  ;;  %v4465_v43 = vld [vmem:[%s5873_s5 + $0x114] sm:$0xff] }
 0x1d3   : > { %1381 = vmatpush.bf16.msra.mxu2 %v1359_v45  ;;  %3533 = vmatmul.msk.bf16.vlgmr.msra.gmra.mxu1 %vm1351_vm3, %v1350_v44 }
 0x1d4   : > { %1414 = vmatpush.bf16.msrb.mxu1 %v1359_v45  ;;  %1447 = vmatpush.bf16.msrb.mxu3 %v1359_v45 }
 0x1d5   : > { %3536 = vmatmul.msk.bf16.vlgmr.msra.gmra.mxu3 %vm1351_vm3, %v3535_v46  ;;  %3542 = vmatmul.msk.bf16.vlgmr.msrb.gmra.mxu0 %vm1351_vm3, %v5259_v29 }
 0x1d6   : > { %3534 = vmatmul.msk.bf16.vlgmr.msra.gmra.mxu2 %vm1351_vm3, %v1350_v44  ;;  %1645 = vmatpush.bf16.msra.mxu0 %v4450_v47  ;;  %v4454_v44 = vld [vmem:[%s5873_s5 + $0xb8] sm:$0xff] }
 0x1d7   : > { %1434 = vmatpush.bf16.msrb.mxu2 %v1356_v24 }
 0x1d8   : > { %1480 = vmatpush.bf16.msra.mxu1 %v1359_v45  ;;  %1513 = vmatpush.bf16.msra.mxu3 %v1359_v45  ;;  %v4455_v45 = vld [vmem:[%s5873_s5 + $0xc0] sm:$0xff] }
 0x1da   : > { %1646 = vmatpush.bf16.msra.mxu0 %v4449_v48  ;;  %v4505_v48 = vld [vmem:[%s5873_s5 + $0x260] sm:$0xff] }
 0x1db   : > { %1500 = vmatpush.bf16.msra.mxu2 %v1356_v24  ;;  %v4456_v24 = vld [vmem:[%s5873_s5 + $0xc8] sm:$0xff] }
 0x1de   : > { %1647 = vmatpush.bf16.msra.mxu0 %v4448_v54  ;;  %v4504_v54 = vld [vmem:[%s5873_s5 + $0x258] sm:$0xff] }
 0x1e2   : > { %1648 = vmatpush.bf16.msra.mxu0 %v4447_v50 }
 0x1e3   : > { %3537 = vmatmul.msk.bf16.vlgmr.msrb.gmra.mxu1 %vm1351_vm3, %v3535_v46  ;;  %v3909_v46 = vld [vmem:[%s5873_s5 + $0x280] sm:$0x3] }
 0x1e4   : > { %1662 = vmatpush.bf16.msrb.mxu1 %v1643_v56 }
 0x1e5   : > { %3540 = vmatmul.msk.bf16.vlgmr.msrb.gmra.mxu3 %vm1351_vm3, %v3538_v2 }
 0x1e6   : > { %3539 = vmatmul.msk.bf16.vlgmr.msrb.gmra.mxu2 %vm1351_vm3, %v3538_v2  ;;  %1763 = vmatpush.bf16.msrb.mxu3 %v1744_v58  ;;  %v4503_v58 = vld [vmem:[%s5873_s5 + $0x250] sm:$0xff] }
 0x1e7   : > { %1746 = vmatpush.bf16.msrb.mxu2 %v4439_v53  ;;  %1649 = vmatpush.bf16.msra.mxu0 %v4446_v5  ;;  %v4483_v53 = vld [vmem:[%s5873_s5 + $0x1a8] sm:$0xff] }
 0x1e8   : > { %1663 = vmatpush.bf16.msrb.mxu1 %v4453_v8  ;;  %v2093_v8 = vunpack.c.l.b16 %v3818_v62 }
 0x1ea   : > { %1764 = vmatpush.bf16.msrb.mxu3 %v4442_v13  ;;  %v4508_v13 = vld [vmem:[%s5873_s5 + $0x278] sm:$0xff]  ;;  %v2105_v12 = vpack.c.b16 %v2093_v8, %v2093_v8  ;;  %v4491_v8 = vld [vmem:[%s5873_s5 + $0x1ec] sm:$0xff] }
 0x1eb   : > { %1747 = vmatpush.bf16.msrb.mxu2 %v4438_v6  ;;  %1650 = vmatpush.bf16.msra.mxu0 %v4445_v23  ;;  %v4482_v23 = vld [vmem:[%s5873_s5 + $0x1a0] sm:$0xff] }
 0x1ec   : > { %1664 = vmatpush.bf16.msrb.mxu1 %v4452_v9  ;;  %v4502_v9 = vld [vmem:[%s5873_s5 + $0x248] sm:$0xff] }
 0x1ee   : > { %1765 = vmatpush.bf16.msrb.mxu3 %v4441_v14 }
 0x1ef   : > { %1748 = vmatpush.bf16.msrb.mxu2 %v4437_v3  ;;  %1651 = vmatpush.bf16.msra.mxu0 %v4444_v61  ;;  %v4507_v3 = vld [vmem:[%s5873_s5 + $0x270] sm:$0xff] }
 0x1f0   : > { %1665 = vmatpush.bf16.msrb.mxu1 %v4451_v32  ;;  %v4481_v32 = vld [vmem:[%s5873_s5 + $0x198] sm:$0xff] }
 0x1f2   : > { %1766 = vmatpush.bf16.msrb.mxu3 %v4440_v10 }
 0x1f3   : > { %1749 = vmatpush.bf16.msrb.mxu2 %v4436_v34  ;;  %3543 = vmatmul.msk.bf16.vlgmr.msra.gmra.mxu1 %vm1351_vm3, %v5259_v29  ;;  %v2243_v29 = vunpack.c.l.b16 %v3909_v46  ;;  %v2121_v34 = vsel %vm1641_vm4, %v2105_v12, 0  ;;  %v4476_v46 = vld [vmem:[%s5873_s5 + $0x170] sm:$0xff] }
 0x1f4   : > { %1652 = vmatpush.bf16.msra.mxu0 %v4443_v11  ;;  %1871 = vmatpush.bf16.msra.mxu1 %v4461_v15  ;;  %v4506_v11 = vld [vmem:[%s5873_s5 + $0x268] sm:$0xff]  ;;  %v4480_v15 = vld [vmem:[%s5873_s5 + $0x190] sm:$0xff] }
 0x1f5   : > { %3546 = vmatmul.msk.bf16.vlgmr.msra.gmra.mxu3 %vm1351_vm3, %v3544_v35  ;;  %v2255_v51 = vpack.c.b16 %v2243_v29, %v2243_v29  ;;  %v4493_v29 = vld [vmem:[%s5873_s5 + $0x1fc] sm:$0xff] }
 0x1f6   : > { %3545 = vmatmul.msk.bf16.vlgmr.msra.gmra.mxu2 %vm1351_vm3, %v3544_v35  ;;  %1888 = vmatpush.bf16.msra.mxu3 %v1869_v55 }
 0x1f7   : > { %1750 = vmatpush.bf16.msrb.mxu2 %v4435_v16  ;;  %v2268_v2 = vsel %vm1641_vm4, %v2255_v51, 0  ;;  %v4500_v16 = vld [vmem:[%s5873_s5 + $0x238] sm:$0xff] }
 0x1f8   : > { %1997 = vmatpush.bf16.msrb.mxu0 %v4472_v38  ;;  %1872 = vmatpush.bf16.msra.mxu1 %v4460_v4  ;;  %v4486_v38 = vld [vmem:[%s5873_s5 + $0x1c0] sm:$0xff]  ;;  %v4519_v51 = vld [vmem:[%s5873_s5 + $0x2d4] sm:$0xff] }
 0x1f9   : > { %v4516_v4 = vld [vmem:[%s5873_s5 + $0x2bc] sm:$0xff] }
 0x1fa   : > { %1889 = vmatpush.bf16.msra.mxu3 %v4464_v60  ;;  %v4514_v60 = vld [vmem:[%s5873_s5 + $0x2ac] sm:$0xff] }
 0x1fb   : > { %1751 = vmatpush.bf16.msrb.mxu2 %v4434_v18 }
 0x1fc   : > { %1998 = vmatpush.bf16.msrb.mxu0 %v4471_v17  ;;  %1873 = vmatpush.bf16.msra.mxu1 %v4459_v31  ;;  %v4498_v31 = vld [vmem:[%s5873_s5 + $0x228] sm:$0xff] }
 0x1fe   : > { %1890 = vmatpush.bf16.msra.mxu3 %v4463_v36 }
 0x1ff   : > { %1752 = vmatpush.bf16.msrb.mxu2 %v4433_v21  ;;  %v4485_v21 = vld [vmem:[%s5873_s5 + $0x1b8] sm:$0xff] }
 0x200   : > { %1999 = vmatpush.bf16.msrb.mxu0 %v4470_v20  ;;  %1874 = vmatpush.bf16.msra.mxu1 %v4458_v33  ;;  %v4479_v20 = vld [vmem:[%s5873_s5 + $0x188] sm:$0xff] }
 0x202   : > { %1891 = vmatpush.bf16.msra.mxu3 %v4462_v42  ;;  %v4494_v42 = vld [vmem:[%s5873_s5 + $0x204] sm:$0xff] }
 0x203   : > { %1753 = vmatpush.bf16.msrb.mxu2 %v4432_v26  ;;  %v2463_v26 = vunpack.c.l.b16 %v4022_v57  ;;  %v4488_v57 = vld [vmem:[%s5873_s5 + $0x1d4] sm:$0xff] }
 0x204   : > { %2000 = vmatpush.bf16.msrb.mxu0 %v4469_v25  ;;  %1875 = vmatpush.bf16.msra.mxu1 %v4457_v41  ;;  %v4515_v25 = vld [vmem:[%s5873_s5 + $0x2b4] sm:$0xff] }
 0x205   : > { %v4477_v41 = vld [vmem:[%s5873_s5 + $0x178] sm:$0xff] }
 0x207   : > { %2014 = vmatpush.bf16.msra.mxu2 %v1995_v27  ;;  %v3886_v27 = vld [vmem:[%s5873_s5 + $0x224] sm:$0x3] }
 0x208   : > { %2001 = vmatpush.bf16.msrb.mxu0 %v4468_v28  ;;  %1876 = vmatpush.bf16.msra.mxu1 %v4456_v24  ;;  %v4478_v28 = vld [vmem:[%s5873_s5 + $0x180] sm:$0xff]  ;;  %v2341_v33 = vunpack.c.l.b16 %v3886_v27  ;;  %v4534_v27 = vld [vmem:[%s5873_s5 + $0x354] sm:$0xff] }
 0x209   : > { %v4513_v24 = vld [vmem:[%s5873_s5 + $0x2a4] sm:$0xff] }
 0x20b   : > { %2015 = vmatpush.bf16.msra.mxu2 %v4475_v30  ;;  %v4484_v30 = vld [vmem:[%s5873_s5 + $0x1b0] sm:$0xff] }
 0x20c   : > { %2002 = vmatpush.bf16.msrb.mxu0 %v4467_v7  ;;  %1877 = vmatpush.bf16.msra.mxu1 %v4455_v45  ;;  %v2475_v7 = vpack.c.b16 %v2463_v26, %v2463_v26 }
 0x20e   : > { %v2488_v45 = vsel %vm1641_vm4, %v2475_v7, 0  ;;  %v4529_v7 = vld [vmem:[%s5873_s5 + $0x328] sm:$0xff] }
 0x20f   : > { %2016 = vmatpush.bf16.msra.mxu2 %v4474_v63 }
 0x210   : > { %2003 = vmatpush.bf16.msrb.mxu0 %v4466_v39  ;;  %1878 = vmatpush.bf16.msra.mxu1 %v4454_v44  ;;  %v2353_v44 = vpack.c.b16 %v2341_v33, %v2341_v33  ;;  %v4521_v33 = vld [vmem:[%s5873_s5 + $0x2e8] sm:$0xff] }
 0x213   : > { %2017 = vmatpush.bf16.msra.mxu2 %v4473_v40 }
 0x214   : > { %2004 = vmatpush.bf16.msrb.mxu0 %v4465_v43 }
 0x250   : > { %v1370_v47 = vpop.f32.mrf.mxu1 }
 0x251   : > { %v5431_v49 = vpack.c.bf16 %v1370_v47, %v1370_v47  ;;  %v2366_v47 = vsel %vm1641_vm4, %v2353_v44, 0 }
 0x252   : > { %v1469_v52 = vpop.f32.mrf.mxu0 }
 0x253   : > { %1754 = vmatmul.bf16.vlgmr.msrb.gmra.mxu2 %v5431_v49  ;;  %v5486_v35 = vpack.c.bf16 %v1469_v52, %v1469_v52 }
 0x254   : > { %2270 = vmatpush.bf16.msrb.mxu2 %v4505_v48  ;;  %v4512_v48 = vld [vmem:[%s5873_s5 + $0x29c] sm:$0xff] }
 0x258   : > { %v1403_v59 = vpop.f32.mrf.mxu3  ;;  %v1372_v50 = vpop.f32.mrf.mxu1  ;;  %2271 = vmatpush.bf16.msrb.mxu2 %v4504_v54 }
 0x259   : > { %v5440_v1 = vpack.c.bf16 %v1403_v59, %v1403_v59  ;;  %v1383_v56 = vpop.f32.mrf.mxu2  ;;  %v4492_v59 = vld [vmem:[%s5873_s5 + $0x1f4] sm:$0xff]  ;;  %v4497_v50 = vld [vmem:[%s5873_s5 + $0x21c] sm:$0xff] }
 0x25a   : > { %v5449_v5 = vpack.c.bf16 %v1383_v56, %v1383_v56  ;;  %v1471_v6 = vpop.f32.mrf.mxu0  ;;  %v4158_v56 = vld [vmem:[%s5873_s5 + $0x394] sm:$0x3] }
 0x25b   : > { %1653 = vmatmul.bf16.vlgmr.msra.gmra.mxu0 %v5440_v1  ;;  %v4496_v6 = vld [vmem:[%s5873_s5 + $0x214] sm:$0xff] }
 0x25c   : > { %2287 = vmatpush.bf16.msra.mxu0 %v2268_v2  ;;  %3659 = vmatmul.msk.bf16.vlgmr.msrb.gmra.mxu3 %vm1637_vm5, %v5449_v5 }
 0x25d   : > { %2123 = vmatpush.bf16.msrb.mxu3 %v4483_v53  ;;  %2272 = vmatpush.bf16.msrb.mxu2 %v4503_v58  ;;  %v4511_v53 = vld [vmem:[%s5873_s5 + $0x294] sm:$0xff]  ;;  %v4518_v58 = vld [vmem:[%s5873_s5 + $0x2cc] sm:$0xff] }
 0x260   : > { %v1405_v14 = vpop.f32.mrf.mxu3  ;;  %2288 = vmatpush.bf16.msra.mxu0 %v4508_v13  ;;  %v1416_v61 = vpop.f32.mrf.mxu1  ;;  %v2709_v13 = vunpack.c.l.b16 %v4158_v56 }
 0x261   : > { %2124 = vmatpush.bf16.msrb.mxu3 %v4482_v23  ;;  %v1385_v37 = vpop.f32.mrf.mxu2  ;;  %2273 = vmatpush.bf16.msrb.mxu2 %v4502_v9  ;;  %v5469_v10 = vpack.c.bf16 %v1416_v61, %v1416_v61  ;;  %v4510_v23 = vld [vmem:[%s5873_s5 + $0x28c] sm:$0xff]  ;;  %v4517_v9 = vld [vmem:[%s5873_s5 + $0x2c4] sm:$0xff] }
 0x262   : > { %v4538_v37 = vld [vmem:[%s5873_s5 + $0x374] sm:$0xff]  ;;  %v2721_v61 = vpack.c.b16 %v2709_v13, %v2709_v13 }
 0x263   : > { %3614 = vmatmul.msk.bf16.vlgmr.msrb.gmra.mxu1 %vm1637_vm5, %v5469_v10 }
 0x264   : > { %2289 = vmatpush.bf16.msra.mxu0 %v4507_v3  ;;  %2140 = vmatpush.bf16.msrb.mxu1 %v2121_v34  ;;  %v4490_v3 = vld [vmem:[%s5873_s5 + $0x1e4] sm:$0xff]  ;;  %v4527_v34 = vld [vmem:[%s5873_s5 + $0x318] sm:$0xff] }
 0x265   : > { %2125 = vmatpush.bf16.msrb.mxu3 %v4481_v32  ;;  %2274 = vmatpush.bf16.msrb.mxu2 %v4501_v0  ;;  %v4509_v0 = vld [vmem:[%s5873_s5 + $0x284] sm:$0xff] }
 0x268   : > { %v1449_v55 = vpop.f32.mrf.mxu3  ;;  %2290 = vmatpush.bf16.msra.mxu0 %v4506_v11  ;;  %v1418_v18 = vpop.f32.mrf.mxu1  ;;  %2141 = vmatpush.bf16.msrb.mxu1 %v4486_v38  ;;  %v4090_v11 = vld [vmem:[%s5873_s5 + $0x338] sm:$0x3]  ;;  %v4537_v38 = vld [vmem:[%s5873_s5 + $0x36c] sm:$0xff] }
 0x269   : > { %v5494_v17 = vpack.c.bf16 %v1449_v55, %v1449_v55  ;;  %2126 = vmatpush.bf16.msrb.mxu3 %v4480_v15  ;;  %v1436_v19 = vpop.f32.mrf.mxu2  ;;  %2275 = vmatpush.bf16.msrb.mxu2 %v4500_v16  ;;  %v4489_v15 = vld [vmem:[%s5873_s5 + $0x1dc] sm:$0xff]  ;;  %v2734_v16 = vsel %vm1641_vm4, %v2721_v61, 0  ;;  %v2586_v55 = vunpack.c.l.b16 %v4090_v11  ;;  %v4536_v18 = vld [vmem:[%s5873_s5 + $0x364] sm:$0xff] }
 0x26a   : > { %v5529_v36 = vpack.c.bf16 %v1436_v19, %v1436_v19  ;;  %v4525_v19 = vld [vmem:[%s5873_s5 + $0x308] sm:$0xff] }
 0x26b   : > { %2005 = vmatmul.bf16.vlgmr.msrb.gmra.mxu0 %v5486_v35 }
 0x26c   : > { %2490 = vmatpush.bf16.msrb.mxu0 %v4516_v4  ;;  %3727 = vmatmul.msk.bf16.vlgmr.msra.gmra.mxu3 %vm1637_vm5, %v5494_v17  ;;  %v4541_v4 = vld [vmem:[%s5873_s5 + $0x38c] sm:$0xff] }
 0x26d   : > { %2127 = vmatpush.bf16.msrb.mxu3 %v4479_v20  ;;  %2142 = vmatpush.bf16.msrb.mxu1 %v4485_v21  ;;  %v2598_v20 = vpack.c.b16 %v2586_v55, %v2586_v55  ;;  %v4540_v21 = vld [vmem:[%s5873_s5 + $0x384] sm:$0xff] }
 0x26e   : > { %2276 = vmatpush.bf16.msrb.mxu2 %v4499_v22  ;;  %v4487_v22 = vld [vmem:[%s5873_s5 + $0x1cc] sm:$0xff] }
 0x26f   : > { %v2611_v26 = vsel %vm1641_vm4, %v2598_v20, 0 }
 0x270   : > { %2491 = vmatpush.bf16.msrb.mxu0 %v4515_v25  ;;  %v1451_v63 = vpop.f32.mrf.mxu3  ;;  %v1482_v40 = vpop.f32.mrf.mxu1  ;;  %v4535_v25 = vld [vmem:[%s5873_s5 + $0x35c] sm:$0xff] }
 0x271   : > { %2128 = vmatpush.bf16.msrb.mxu3 %v4478_v28  ;;  %v1438_v39 = vpop.f32.mrf.mxu2  ;;  %2143 = vmatpush.bf16.msrb.mxu1 %v4484_v30  ;;  %v5537_v43 = vpack.c.bf16 %v1482_v40, %v1482_v40  ;;  %v4539_v28 = vld [vmem:[%s5873_s5 + $0x37c] sm:$0xff]  ;;  %v4530_v30 = vld [vmem:[%s5873_s5 + $0x330] sm:$0xff] }
 0x272   : > { %2277 = vmatpush.bf16.msrb.mxu2 %v4498_v31  ;;  %v4523_v31 = vld [vmem:[%s5873_s5 + $0x2f8] sm:$0xff]  ;;  %v4522_v63 = vld [vmem:[%s5873_s5 + $0x2f0] sm:$0xff]  ;;  %v4520_v39 = vld [vmem:[%s5873_s5 + $0x2e0] sm:$0xff] }
 0x273   : > { %1879 = vmatmul.bf16.vlgmr.msra.gmra.mxu1 %v5529_v36  ;;  %3795 = vmatmul.msk.bf16.vlgmr.msra.gmra.mxu2 %vm1637_vm5, %v5537_v43 }
 0x274   : > { %2492 = vmatpush.bf16.msrb.mxu0 %v4514_v60  ;;  %v4533_v60 = vld [vmem:[%s5873_s5 + $0x34c] sm:$0xff] }
 0x275   : > { %2129 = vmatpush.bf16.msrb.mxu3 %v4477_v41  ;;  %2368 = vmatpush.bf16.msra.mxu1 %v4494_v42 }
 0x276   : > { %2507 = vmatpush.bf16.msra.mxu2 %v2488_v45 }
 0x278   : > { %2493 = vmatpush.bf16.msrb.mxu0 %v4513_v24  ;;  %v1515_v52 = vpop.f32.mrf.mxu3  ;;  %v1484_v62 = vpop.f32.mrf.mxu1 }
 0x279   : > { %2130 = vmatpush.bf16.msrb.mxu3 %v4476_v46  ;;  %v1502_v54 = vpop.f32.mrf.mxu2  ;;  %2369 = vmatpush.bf16.msra.mxu1 %v4493_v29  ;;  %v5591_v14 = vpack.c.bf16 %v1515_v52, %v1515_v52 }
 0x27a   : > { %v5562_v2 = vpack.c.bf16 %v1502_v54, %v1502_v54  ;;  %2508 = vmatpush.bf16.msra.mxu2 %v4519_v51 }
 0x27b   : > { %3954 = vmatmul.msk.bf16.vlgmr.msra.gmra.mxu0 %vm1637_vm5, %v5469_v10  ;;  %v4495_v10 = vld [vmem:[%s5873_s5 + $0x20c] sm:$0xff] }
 0x27c   : > { %2494 = vmatpush.bf16.msrb.mxu0 %v4512_v48  ;;  %2131 = vmatmul.bf16.vlgmr.msrb.gmra.mxu3 %v5562_v2 }
 0x27d   : > { %2385 = vmatpush.bf16.msra.mxu3 %v2366_v47  ;;  %2370 = vmatpush.bf16.msra.mxu1 %v4492_v59 }
 0x27e   : > { %2509 = vmatpush.bf16.msra.mxu2 %v4518_v58 }
 0x280   : > { %2495 = vmatpush.bf16.msrb.mxu0 %v4511_v53  ;;  %v1517_v12 = vpop.f32.mrf.mxu3 }
 0x281   : > { %2386 = vmatpush.bf16.msra.mxu3 %v4497_v50  ;;  %2371 = vmatpush.bf16.msra.mxu1 %v4491_v8  ;;  %v1504_v32 = vpop.f32.mrf.mxu2  ;;  %v4218_v12 = vld [vmem:[%s5875_s7 + $0x74] sm:$0xf] }
 0x282   : > { %2510 = vmatpush.bf16.msra.mxu2 %v4517_v9 }
 0x283   : > { %3863 = vmatmul.msk.bf16.vlgmr.msrb.gmra.mxu1 %vm1637_vm5, %v5591_v14  ;;  %2278 = vmatmul.bf16.vlgmr.msrb.gmra.mxu2 %v5440_v1  ;;  %v4526_v1 = vld [vmem:[%s5873_s5 + $0x310] sm:$0xff] }
 0x284   : > { %2496 = vmatpush.bf16.msrb.mxu0 %v4510_v23 }
 0x285   : > { %2387 = vmatpush.bf16.msra.mxu3 %v4496_v6  ;;  %2372 = vmatpush.bf16.msra.mxu1 %v4490_v3  ;;  %v2841_v3 = vunpack.c.l.b16 %v4218_v12 }
 0x286   : > { %2736 = vmatpush.bf16.msrb.mxu2 %v4538_v37 }
 0x287   : > { %v2849_v11 = vpack.c.b16 %v2841_v3, %v2841_v3 }
 0x288   : > { %2497 = vmatpush.bf16.msrb.mxu0 %v4509_v0 }
 0x289   : > { %2388 = vmatpush.bf16.msra.mxu3 %v4495_v10  ;;  %2373 = vmatpush.bf16.msra.mxu1 %v4489_v15  ;;  %v4548_v10 = vld [vmem:[%s5875_s7 + $0x30] sm:$0xff]  ;;  %v2862_v55 = vsel %vm1319_vm2, %v2849_v11, 0 }
 0x28a   : > { %2737 = vmatpush.bf16.msrb.mxu2 %v4537_v38 }
 0x28b   : > { %2498 = vmatmul.bf16.vlgmr.msrb.gmra.mxu0 %v5529_v36  ;;  %v4531_v36 = vld [vmem:[%s5873_s5 + $0x33c] sm:$0xff] }
 0x28c   : > { %2753 = vmatpush.bf16.msra.mxu0 %v2734_v16  ;;  %3999 = vmatmul.msk.bf16.vlgmr.msra.gmra.mxu3 %vm1637_vm5, %v5449_v5  ;;  %v4524_v5 = vld [vmem:[%s5873_s5 + $0x300] sm:$0xff] }
 0x28d   : > { %2613 = vmatpush.bf16.msrb.mxu3 %v4527_v34  ;;  %2374 = vmatpush.bf16.msra.mxu1 %v4488_v57  ;;  %v4335_v34 = vld [vmem:[%s5875_s7 + $0xec] sm:$0xf] }
 0x28e   : > { %2738 = vmatpush.bf16.msrb.mxu2 %v4536_v18  ;;  %v3069_v38 = vunpack.c.l.b16 %v4335_v34  ;;  %v4555_v18 = vld [vmem:[%s5875_s7 + $0x6c] sm:$0xff] }
 0x290   : > { %2754 = vmatpush.bf16.msra.mxu0 %v4541_v4  ;;  %v3077_v57 = vpack.c.b16 %v3069_v38, %v3069_v38 }
 0x291   : > { %2614 = vmatpush.bf16.msrb.mxu3 %v4526_v1  ;;  %2375 = vmatpush.bf16.msra.mxu1 %v4487_v22  ;;  %v4547_v1 = vld [vmem:[%s5875_s7 + $0x28] sm:$0xff] }
 0x292   : > { %2739 = vmatpush.bf16.msrb.mxu2 %v4535_v25  ;;  %v3089_v20 = vsel %vm1319_vm2, %v3077_v57, 0  ;;  %v4546_v25 = vld [vmem:[%s5875_s7 + $0x20] sm:$0xff] }
 0x293   : > { %4067 = vmatmul.msk.bf16.vlgmr.msra.gmra.mxu2 %vm1637_vm5, %v5494_v17  ;;  %v4528_v17 = vld [vmem:[%s5873_s5 + $0x320] sm:$0xff] }
 0x294   : > { %2755 = vmatpush.bf16.msra.mxu0 %v4540_v21  ;;  %2376 = vmatmul.bf16.vlgmr.msra.gmra.mxu1 %v5431_v49  ;;  %v4532_v49 = vld [vmem:[%s5873_s5 + $0x344] sm:$0xff]  ;;  %v4613_v57 = vld [vmem:[%s5874_s6] ss:$0 sm:$0xff] }
 0x295   : > { %2615 = vmatpush.bf16.msrb.mxu3 %v4525_v19  ;;  %2630 = vmatpush.bf16.msrb.mxu1 %v2611_v26  ;;  %v4562_v19 = vld [vmem:[%s5875_s7 + $0xa8] sm:$0xff] }
 0x296   : > { %2740 = vmatpush.bf16.msrb.mxu2 %v4534_v27 }
 0x298   : > { %2756 = vmatpush.bf16.msra.mxu0 %v4539_v28  ;;  %v4554_v28 = vld [vmem:[%s5875_s7 + $0x64] sm:$0xff] }
 0x299   : > { %2616 = vmatpush.bf16.msrb.mxu3 %v4524_v5  ;;  %2631 = vmatpush.bf16.msrb.mxu1 %v4530_v30  ;;  %v4569_v5 = vld [vmem:[%s5875_s7 + $0xe4] sm:$0xff] }
 0x29a   : > { %2741 = vmatpush.bf16.msrb.mxu2 %v4533_v60  ;;  %v4561_v30 = vld [vmem:[%s5875_s7 + $0xa0] sm:$0xff] }
 0x29b   : > { %4203 = vmatmul.msk.bf16.vlgmr.msra.gmra.mxu0 %vm1637_vm5, %v5591_v14  ;;  %v4291_v14 = vld [vmem:[%s5875_s7 + $0xb0] sm:$0xf]  ;;  %v4568_v60 = vld [vmem:[%s5875_s7 + $0xdc] sm:$0xff] }
 0x29c   : > { %v2987_v37 = vunpack.c.l.b16 %v4291_v14 }
 0x29d   : > { %2617 = vmatpush.bf16.msrb.mxu3 %v4523_v31  ;;  %2632 = vmatpush.bf16.msrb.mxu1 %v4529_v7  ;;  %v4545_v31 = vld [vmem:[%s5875_s7 + $0x18] sm:$0xff] }
 0x29e   : > { %2742 = vmatpush.bf16.msrb.mxu2 %v4532_v49  ;;  %v2995_v15 = vpack.c.b16 %v2987_v37, %v2987_v37  ;;  %v4553_v7 = vld [vmem:[%s5875_s7 + $0x5c] sm:$0xff] }
 0x2a0   : > { %v3007_v4 = vsel %vm1319_vm2, %v2995_v15, 0 }
 0x2a1   : > { %2618 = vmatpush.bf16.msrb.mxu3 %v4522_v63  ;;  %2633 = vmatpush.bf16.msrb.mxu1 %v4528_v17  ;;  %v4560_v63 = vld [vmem:[%s5875_s7 + $0x98] sm:$0xff] }
 0x2a2   : > { %2743 = vmatpush.bf16.msrb.mxu2 %v4531_v36  ;;  %3009 = vmatpush.bf16.msrb.mxu0 %v3007_v4  ;;  %v4567_v36 = vld [vmem:[%s5875_s7 + $0xd4] sm:$0xff] }
 0x2a4   : > { %4135 = vmatmul.msk.bf16.vlgmr.msrb.gmra.mxu1 %vm1637_vm5, %v5537_v43 }
 0x2a5   : > { %2619 = vmatpush.bf16.msrb.mxu3 %v4521_v33  ;;  %2744 = vmatmul.bf16.vlgmr.msrb.gmra.mxu2 %v5562_v2  ;;  %v4544_v33 = vld [vmem:[%s5875_s7 + $0x10] sm:$0xff] }
 0x2a6   : > { %2864 = vmatpush.bf16.msra.mxu1 %v2862_v55  ;;  %3091 = vmatpush.bf16.msra.mxu2 %v3089_v20 }
 0x2a7   : > { %3010 = vmatpush.bf16.msrb.mxu0 %v4562_v19 }
 0x2a9   : > { %2620 = vmatpush.bf16.msrb.mxu3 %v4520_v39 }
 0x2aa   : > { %2865 = vmatpush.bf16.msra.mxu1 %v4555_v18  ;;  %3092 = vmatpush.bf16.msra.mxu2 %v4569_v5  ;;  %v4573_v5 = vld [vmem:[%s5877_s9 + $0x18] sm:$0xff] }
 0x2ab   : > { %3011 = vmatpush.bf16.msrb.mxu0 %v4561_v30 }
 0x2ac   : > { %2621 = vmatmul.bf16.vlgmr.msrb.gmra.mxu3 %v5486_v35  ;;  %v2789_v35 = vld [vmem:[%s5875_s7 + $0x38] sm:$0xf] }
 0x2ad   : > { %v2906_v8 = vunpack.c.l.b16 %v2789_v35 }
 0x2ae   : > { %2866 = vmatpush.bf16.msra.mxu1 %v4554_v28  ;;  %3093 = vmatpush.bf16.msra.mxu2 %v4568_v60  ;;  %v4570_v28 = vld [vmem:[%s5877_s9] sm:$0xff] }
 0x2af   : > { %v2914_v23 = vpack.c.b16 %v2906_v8, %v2906_v8  ;;  %3012 = vmatpush.bf16.msrb.mxu0 %v4560_v63 }
 0x2b1   : > { %v2926_v9 = vsel %vm1319_vm2, %v2914_v23, 0 }
 0x2b2   : > { %2928 = vmatpush.bf16.msra.mxu3 %v2926_v9  ;;  %2867 = vmatpush.bf16.msra.mxu1 %v4553_v7 }
 0x2b3   : > { %3094 = vmatpush.bf16.msra.mxu2 %v4567_v36 }
 0x2b6   : > { %2929 = vmatpush.bf16.msra.mxu3 %v4548_v10 }
 0x2ba   : > { %2930 = vmatpush.bf16.msra.mxu3 %v4547_v1 }
 0x2be   : > { %2931 = vmatpush.bf16.msra.mxu3 %v4546_v25 }
 0x2c2   : > { %2932 = vmatpush.bf16.msra.mxu3 %v4545_v31 }
 0x2c6   : > { %2933 = vmatpush.bf16.msra.mxu3 %v4544_v33 }
 0x2d6   : > { %v1755_v41 = vpop.f32.mrf.mxu2 }
 0x2d8   : > { %v1654_v40 = vpop.f32.mrf.mxu0 }
 0x2de   : > { %v1757_v45 = vpop.f32.mrf.mxu2 }
 0x2df   : > { %v1768_v24 = vpop.f32.mrf.mxu3  ;;  %v4566_v45 = vld [vmem:[%s5875_s7 + $0xcc] sm:$0xff] }
 0x2e0   : > { %v1656_v42 = vpop.f32.mrf.mxu0  ;;  %v1667_v44 = vpop.f32.mrf.mxu1  ;;  %3095 = vmatpush.bf16.msra.mxu2 %v4566_v45 }
 0x2e1   : > { %v1668_v46 = vadd.f32 %v1667_v44, %v1654_v40  ;;  %v4559_v42 = vld [vmem:[%s5875_s7 + $0x90] sm:$0xff] }
 0x2e2   : > { %3013 = vmatpush.bf16.msrb.mxu0 %v4559_v42  ;;  %v4551_v44 = vld [vmem:[%s5875_s7 + $0x4c] sm:$0xff] }
 0x2e3   : > { %v1756_v29 = vadd.f32 %v1755_v41, %v1668_v46  ;;  %v4552_v41 = vld [vmem:[%s5875_s7 + $0x54] sm:$0xff]  ;;  %v4558_v46 = vld [vmem:[%s5875_s7 + $0x88] sm:$0xff] }
 0x2e4   : > { %2868 = vmatpush.bf16.msra.mxu1 %v4552_v41 }
 0x2e5   : > { %v1769_v47 = vadd.f32 %v1768_v24, %v1756_v29  ;;  %v4543_v24 = vld [vmem:[%s5875_s7 + $0x8] sm:$0xff] }
 0x2e6   : > { %2934 = vmatpush.bf16.msra.mxu3 %v4543_v24  ;;  %3014 = vmatpush.bf16.msrb.mxu0 %v4558_v46 }
 0x2e7   : > { %v1770_v48 = vpop.f32.mrf.mxu3 }
 0x2e8   : > { %v2006_v51 = vpop.f32.mrf.mxu0  ;;  %v1669_v52 = vpop.f32.mrf.mxu1  ;;  %2869 = vmatpush.bf16.msra.mxu1 %v4551_v44  ;;  %v4542_v48 = vld [vmem:[%s5875_s7] sm:$0xff] }
 0x2e9   : > { %v3117_v44 = vld [vmem:[%s5878_s10] sm:$0x1] }
 0x2ea   : > { %2935 = vmatpush.bf16.msra.mxu3 %v4542_v48 }
 0x2ef   : > { %v1893_v54 = vpop.f32.mrf.mxu3 }
 0x2f0   : > { %v2008_v59 = vpop.f32.mrf.mxu0  ;;  %v1880_v62 = vpop.f32.mrf.mxu1 }
 0x2f1   : > { %v1894_v43 = vadd.f32 %v1893_v54, %v1880_v62  ;;  %v4550_v59 = vld [vmem:[%s5875_s7 + $0x44] sm:$0xff] }
 0x2f2   : > { %v4557_v62 = vld [vmem:[%s5875_s7 + $0x80] sm:$0xff]  ;;  %2870 = vmatpush.bf16.msra.mxu1 %v4550_v59 }
 0x2f3   : > { %v1897_v56 = vadd.f32 %v1894_v43, %v1769_v47  ;;  %3015 = vmatpush.bf16.msrb.mxu0 %v4557_v62  ;;  %v4564_v43 = vld [vmem:[%s5875_s7 + $0xbc] sm:$0xff] }
 0x2f6   : > { %v2019_v2 = vpop.f32.mrf.mxu2 }
 0x2f7   : > { %v1895_v50 = vpop.f32.mrf.mxu3  ;;  %v2020_v53 = vadd.f32 %v2019_v2, %v2006_v51  ;;  %v4565_v51 = vld [vmem:[%s5875_s7 + $0xc4] sm:$0xff]  ;;  %v4556_v2 = vld [vmem:[%s5875_s7 + $0x78] sm:$0xff] }
 0x2f8   : > { %v5700_v58 = vpop.f32.mrf.mxu0  ;;  %v1882_v13 = vpop.f32.mrf.mxu1  ;;  %3096 = vmatpush.bf16.msra.mxu2 %v4565_v51  ;;  %v4549_v50 = vld [vmem:[%s5875_s7 + $0x3c] sm:$0xff]  ;;  %3016 = vmatpush.bf16.msrb.mxu0 %v4556_v2 }
 0x2f9   : > { %v5702_v6 = vadd.f32 %v2020_v53, %v1897_v56  ;;  %2871 = vmatpush.bf16.msra.mxu1 %v4549_v50  ;;  %v4563_v56 = vld [vmem:[%s5875_s7 + $0xb4] sm:$0xff] }
 0x2fc   : > { %3097 = vmatpush.bf16.msra.mxu2 %v4564_v43 }
 0x2fd   : > { %3150 = vmatpush.bf16.msrb.mxu1 %v4573_v5 }
 0x2fe   : > { %v2021_v61 = vpop.f32.mrf.mxu2 }
 0x2ff   : > { %v5711_v32 = vpop.f32.mrf.mxu3 }
 0x300   : > { %v2294_v0 = vpop.f32.mrf.mxu0  ;;  %v5719_v16 = vpop.f32.mrf.mxu1  ;;  %3098 = vmatpush.bf16.msra.mxu2 %v4563_v56 }
 0x301   : > { %v2146_v61 = vadd.f32 %v5719_v16, %v5711_v32 }
 0x303   : > { %v2149_v15 = vadd.f32 %v2146_v61, %v5702_v6 }
 0x306   : > { %v5733_v22 = vpop.f32.mrf.mxu2 }
 0x307   : > { %v2134_v21 = vpop.f32.mrf.mxu3  ;;  %v2293_v13 = vadd.f32 %v5700_v58, %v5733_v22 }
 0x308   : > { %v2499_v26 = vpop.f32.mrf.mxu0  ;;  %v2147_v27 = vpop.f32.mrf.mxu1 }
 0x309   : > { %v4571_v27 = vld [vmem:[%s5877_s9 + $0x8] sm:$0xff] }
 0x30e   : > { %v2281_v49 = vpop.f32.mrf.mxu2 }
 0x30f   : > { %v2390_v17 = vpop.f32.mrf.mxu3 }
 0x310   : > { %v2501_v39 = vpop.f32.mrf.mxu0 }
 0x311   : > { %v2377_v40 = vpop.f32.mrf.mxu1  ;;  %v3105_v39 = vld [vmem:[%s5876_s8] sm:$0x1] }
 0x312   : > { %v2378_v23 = vadd.f32 %v2377_v40, %v2293_v13 }
 0x314   : > { %v2391_v14 = vadd.f32 %v2390_v17, %v2378_v23 }
 0x316   : > { %v2512_v47 = vpop.f32.mrf.mxu2 }
 0x317   : > { %v2392_v29 = vpop.f32.mrf.mxu3  ;;  %v2513_v9 = vadd.f32 %v2512_v47, %v2499_v26  ;;  %v4572_v26 = vld [vmem:[%s5877_s9 + $0x10] sm:$0xff] }
 0x318   : > { %v2758_v52 = vpop.f32.mrf.mxu0  ;;  %3151 = vmatpush.bf16.msrb.mxu1 %v4572_v26 }
 0x319   : > { %v2379_v54 = vpop.f32.mrf.mxu1  ;;  %v2516_v10 = vadd.f32 %v2513_v9, %v2391_v14 }
 0x31c   : > { %3152 = vmatpush.bf16.msrb.mxu1 %v4571_v27 }
 0x31e   : > { %v2514_v35 = vpop.f32.mrf.mxu2 }
 0x320   : > { %v2760_v53 = vpop.f32.mrf.mxu0  ;;  %3153 = vmatpush.bf16.msrb.mxu1 %v4570_v28 }
 0x321   : > { %v2635_v8 = vpop.f32.mrf.mxu1 }
 0x328   : > { %v2745_v12 = vpop.f32.mrf.mxu2 }
 0x329   : > { %v2637_v37 = vpop.f32.mrf.mxu1  ;;  %v2759_v0 = vadd.f32 %v2758_v52, %v2745_v12 }
 0x32f   : > { %v2622_v3 = vpop.f32.mrf.mxu3 }
 0x330   : > { %v2636_v34 = vadd.f32 %v2635_v8, %v2622_v3  ;;  %v2747_v1 = vpop.f32.mrf.mxu2 }
 0x332   : > { %v2639_v11 = vadd.f32 %v2636_v34, %v2516_v10 }
 0x334   : > { %v2762_v38 = vadd.f32 %v2759_v0, %v2639_v11 }
 0x336   : > { %v2763_v55 = vmax.f32 %v2149_v15, %v2762_v38 }
 0x337   : > { %v2624_v4 = vpop.f32.mrf.mxu3 }
 0x338   : > { %v2765_v58 = vrot.slane %v2763_v55, 4 }
 0x33a   : > { %v2767_v18 = vmax.f32 %v2763_v55, %v2765_v58 }
 0x33c   : > { %v2772_v19 = vadd.f32 %v4613_v57, %v2767_v18 }
 0x33e   : > { %v2773_v20 = vmax.f32 %v2772_v19, 0.0 }
 0x340   : > { %v2774_v32 = vpack.c.bf16 %v2773_v20, %v2773_v20 }
 0x342   : > { %v2807_v16 = vunpack.c.l.b16 %v2774_v32  ;;  %4276 = vmatmul.msk.bf16.vlgmr.msra.gmra.mxu3 %vm2857_vm6, %v2774_v32 }
 0x344   : > { %v2808_v21 = vpack.c.b16 %v2807_v16, %v2807_v16 }
 0x346   : > { %v2810_v22 = vshrl.u32 %v2808_v21, 16  ;;  %v2957_v25 = vrot.slane %v2808_v21, 1 }
 0x348   : > { %4247 = vmatmul.msk.bf16.vlgmr.msra.gmra.mxu1 %vm2857_vm6, %v2810_v22  ;;  %4320 = vmatmul.msk.bf16.vlgmr.msrb.gmra.mxu0 %vm2857_vm6, %v2957_v25  ;;  %v3039_v6 = vrot.slane %v2810_v22, 1 }
 0x34a   : > { %4364 = vmatmul.msk.bf16.vlgmr.msra.gmra.mxu2 %vm2857_vm6, %v3039_v6 }
 0x3c5   : > { %v2873_v30 = vpop.f32.mrf.mxu1  ;;  %v2937_v31 = vpop.f32.mrf.mxu3 }
 0x3c6   : > { %v3018_v60 = vpop.f32.mrf.mxu0  ;;  %v2938_v7 = vadd.f32 %v2937_v31, %v2873_v30 }
 0x3c8   : > { %v3022_v63 = vadd.f32 %v3018_v60, %v2938_v7 }
 0x3cd   : > { %v2875_v49 = vpop.f32.mrf.mxu1  ;;  %v2939_v17 = vpop.f32.mrf.mxu3 }
 0x3ce   : > { %v3020_v33 = vpop.f32.mrf.mxu0  ;;  %v3100_v36 = vpop.f32.mrf.mxu2 }
 0x3cf   : > { %v3104_v40 = vadd.f32 %v3100_v36, %v3022_v63 }
 0x3d1   : > { %v3106_v41 = vadd.f32 %v3105_v39, %v3104_v40 }
 0x3d3   : > { %v3107_v42 = vmax.f32 %v3106_v41, 0.0 }
 0x3d5   : > { %v3108_v24 = vpack.c.bf16 %v3107_v42, %v3107_v42 }
 0x3d6   : > { %v3102_v45 = vpop.f32.mrf.mxu2 }
 0x3d7   : > { %4381 = vmatmul.msk.bf16.vlgmr.msrb.gmra.mxu1 %vm3142_vm7, %v3108_v24 }
 0x454   : > { %v3155_v46 = vpop.f32.mrf.mxu1 }
 0x455   : > { %v3156_v29 = vadd.f32 %v3155_v46, %v3117_v44 }
 0x457   : > { %v3160_v47 = vsel %vm3159_vm8, %v3156_v29, -inf }
 0x458   : > { %3161 = vmax.xlane.f32.xlu0 %v3160_v47 }
 0x45c   : > { %v3157_v48 = vpop.f32.mrf.mxu1 }
 0x4cb   : > { %v3162_v51 = vpop.xlane.xlu0 %3161 }
 0x4cc   : > { %v3163_v52 = vsub.f32 %v3156_v29, %v3162_v51 }
 0x4ce   : > { %v3164_v54 = vmul.f32 1.442695, %v3163_v52 }
 0x4d0   : > { %4614 = vpow2.f32 %v3164_v54 }
 0x4d6   : > { %v4615_v59 = vpop.eup %4614 }
 0x4d7   : > { %v3166_v62 = vsel %vm3159_vm8, %v4615_v59, 0.0 }
 0x4d8   : > { %3167 = vadd.xlane.f32.xlu0 %v3166_v62 }
 0x54b   : > { %v3168_v43 = vpop.xlane.xlu0 %3167 }
 0x54c   : > { %4616 = vlog2.f32 %v3168_v43 }
 0x552   : > { %v4617_v50 = vpop.eup %4616 }
 0x553   : > { %v3170_v2 = vmul.f32 0.6931472, %v4617_v50 }
 0x555   : > { %v3171_v35 = vsub.f32 %v3163_v52, %v3170_v2 }
 0x557   : > { %3172 = vst.msk [vmem:[%s378_s14] sm:$0x1] %vm3159_vm8, %v3171_v35 }
 0x558   : > { %4645 = shalt.err (!%p4642_p3)
}
 0x559   : > { %4574 = dma.vmem_to_hbm [thread:$0]  (%p4780_p5), %s3185_s15, 16, %s3187_s16, %s3174_s22  }
 0x55a PF: > { %p4580_p4 = scmp.ge.s32.totalorder %s4680_s20, 2  ;;  %s3198_s29 = sand.u32 1, %s4668_s17  }
 0x55b   : > { %s3199_s14 = scalar_lea.sflag [#allocation3], %s3198_s29 }
 0x55c   : > { %p4577_p7 = pnand %p4580_p4, %p4784_p6 }
 0x55e   : > { %p4578_p8 = pneg %p4577_p7 }
 0x560   : > { %4663 = dma.done.wait (%p4578_p8), %s3199_s14, 16  }
 0x561   : > { %4665 = vsyncadd (%p4578_p8), %s3199_s14, 4294967280  ;;  %p21_p9 = scmp.ge.s32.totalorder %s4767_s23, 4   ;;  %s5884_s17 = smov %s4672_s18 }
 0x562   : > { %s5885_s18 = smov %s4676_s19  ;;  %s5886_s19 = smov %s4778_s26 }
 0x563   : > { %s5887_s20 = smov %s4767_s23  ;;  %23 = sbr.rel (!%p21_p9) target bundleno = 5 (0x5), region = 128 }
 0x568   :  { %3204 = vsyncpa [#allocation3], 1 }
 0x569   :  { %3206 = vsyncpa [#allocation3 + $0x1], 1 }

</bundles_post_ra>
